<compile_context>
chip_gen: v7x
topology: tpu7x:2x2x1
jax: 0.10.0
libtpu: 0.0.40
codegen_flags: <defaults>
</compile_context>

<pallas_src>
import functools

import jax
import jax.numpy as jnp
from jax.experimental import pallas as pl
from jax.experimental.pallas import tpu as pltpu


def _silu(x):
    return x * jax.nn.sigmoid(x)


def _round_up(x, m):
    return ((x + m - 1) // m) * m


def _adaln_kernel(a_ref, w_ref, lin_ref, c_ref, out_ref, *,
                  C, D, P, half, D_pad, W_lin, R2):
    """One batch-row tile of the full adaLN-single forward.

    a_ref   : (tile, P+1)    f32   [vector_conditioning | timestep]
    w_ref   : (R2+2D, WS)    bf16  rows [0, C+P): blockdiag(te_w1, ae_w1) (2D cols)
                                   rows [R2, R2+2D): [te_w2 ; ae_w2]      (D_pad cols)
    lin_ref : (D_pad, W_lin) bf16  final projection, zero padded
    c_ref   : (8, W_c)       f32   row0 [te_b1|ae_b1], row1 te_b2+ae_b2,
                                   row2 lin_b, row3 freqs
    out_ref : (tile, W_lin + D_pad) f32  [linear(silu(emb)) | emb]
    """
    vcond = a_ref[:, 0:P]                          # starts at lane 0 (aligned)
    t_col = a_ref[:, P:P + 1]

    # Sinusoidal timestep projection (flip_sin_to_cos=True -> [cos | sin]).
    freqs = c_ref[3:4, 0:half]
    args = t_col * freqs                           # (tile, half) f32

    # Fused first layers: [cos|sin|vcond] @ blockdiag(te_w1, ae_w1) -> [h | ha].
    if half % 128 == 0:
        lhs = jnp.concatenate([jnp.cos(args), jnp.sin(args), vcond], axis=-1)
        hs = jnp.dot(lhs.astype(jnp.bfloat16), w_ref[0:C + P, 0:2 * D],
                     preferred_element_type=jnp.float32)
    else:
        # Unaligned lane concat would force an XLU relayout; split the matmul
        # into lane-0-aligned pieces instead.
        hs = (jnp.dot(jnp.cos(args).astype(jnp.bfloat16), w_ref[0:half, 0:2 * D],
                      preferred_element_type=jnp.float32)
              + jnp.dot(jnp.sin(args).astype(jnp.bfloat16), w_ref[half:C, 0:2 * D],
                        preferred_element_type=jnp.float32)
              + jnp.dot(vcond.astype(jnp.bfloat16), w_ref[C:C + P, 0:2 * D],
                        preferred_element_type=jnp.float32))
    hs = hs + c_ref[0:1, 0:2 * D]                  # [te_b1 | ae_b1], f32 add

    # Fused second layers: [silu(h)|silu(ha)] @ [te_w2 ; ae_w2], K = 2D.
    # Weight columns beyond D are zero, so emb lanes [D, D_pad) stay exactly 0.
    emb = jnp.dot(_silu(hs).astype(jnp.bfloat16), w_ref[R2:R2 + 2 * D, 0:D_pad],
                  preferred_element_type=jnp.float32) + c_ref[1:2, 0:D_pad]

    # Final projection; lin_ref rows beyond D are zero so the padded emb is
    # exact.  Both stores below are 128-aligned and 128-multiple wide (dense).
    out = jnp.dot(_silu(emb).astype(jnp.bfloat16), lin_ref[...],
                  preferred_element_type=jnp.float32) + c_ref[2:3, 0:W_lin]
    out_ref[:, 0:W_lin] = out
    out_ref[:, W_lin:W_lin + D_pad] = emb


def pack_adaln_params(p):
    """Pack parameters into 3 VMEM-friendly slabs (bf16 weights, f32 consts)."""
    C, D = p["te_w1"].shape                      # (num_channels, time_embed_dim)
    P = p["ae_w1"].shape[0]                      # projection_class_embeddings_input_dim
    assert C % 2 == 0
    assert p["ae_w1"].shape == (P, D)
    assert p["te_w2"].shape == (D, D) and p["ae_w2"].shape == (D, D)
    assert p["lin_w"].shape == (D, 6 * D)
    for name in ("te_b1", "ae_b1", "te_b2", "ae_b2"):
        assert p[name].reshape(-1).shape == (D,), name
    assert p["lin_b"].reshape(-1).shape == (6 * D,)

    half = C // 2
    out_dim = 6 * D
    D_pad = _round_up(D, 128)                    # emb lanes (dense for D < 128)
    W_lin = _round_up(out_dim, 128)              # final-projection lanes
    WS = _round_up(max(2 * D, D_pad), 128)       # small-weight slab lanes
    R2 = _round_up(C + P, 16)                    # bf16 sublane-aligned w2 offset

    # Small-weight slab: block-diagonal first layers + stacked second layers.
    w_small = jnp.zeros((R2 + 2 * D, WS), jnp.bfloat16)
    w_small = w_small.at[0:C, 0:D].set(p["te_w1"].astype(jnp.bfloat16))
    w_small = w_small.at[C:C + P, D:2 * D].set(p["ae_w1"].astype(jnp.bfloat16))
    w_small = w_small.at[R2:R2 + D, 0:D].set(p["te_w2"].astype(jnp.bfloat16))
    w_small = w_small.at[R2 + D:R2 + 2 * D, 0:D].set(p["ae_w2"].astype(jnp.bfloat16))

    # Final projection slab (kept separate so it can be column-tiled at scale).
    # TODO(synk): at real PixArt dims (D~1152) on v7x, column-tile lin_w /
    # lin_b / out over a second "parallel" grid axis instead of keeping the
    # full (D, 6D) slab VMEM-resident.
    lin_w = jnp.zeros((D_pad, W_lin), jnp.bfloat16)
    lin_w = lin_w.at[0:D, 0:out_dim].set(p["lin_w"].astype(jnp.bfloat16))

    # downscale_freq_shift = 0 -> denominator = half
    exponent = -jnp.log(10000.0) * jnp.arange(half, dtype=jnp.float32) / half
    freqs = jnp.exp(exponent)

    W_c = max(W_lin, D_pad, _round_up(2 * D, 128), _round_up(half, 128))
    consts = jnp.zeros((8, W_c), jnp.float32)
    consts = consts.at[0, 0:D].set(p["te_b1"].reshape(-1).astype(jnp.float32))
    consts = consts.at[0, D:2 * D].set(p["ae_b1"].reshape(-1).astype(jnp.float32))
    consts = consts.at[1, 0:D].set(
        (p["te_b2"].reshape(-1) + p["ae_b2"].reshape(-1)).astype(jnp.float32))
    consts = consts.at[2, 0:out_dim].set(p["lin_b"].reshape(-1).astype(jnp.float32))
    consts = consts.at[3, 0:half].set(freqs)

    packed = {"w_small": w_small, "lin_w": lin_w, "consts": consts}
    meta = dict(C=C, D=D, P=P, half=half, out_dim=out_dim,
                D_pad=D_pad, W_lin=W_lin, WS=WS, W_c=W_c, R2=R2)
    return packed, meta


def ada_layer_norm_single(timestep, vector_conditioning, packed, meta):
    """Returns (linear(silu(emb)), emb) exactly as the PyTorch forward."""
    C, D, P = meta["C"], meta["D"], meta["P"]
    half, D_pad, W_lin = meta["half"], meta["D_pad"], meta["W_lin"]
    out_dim, R2 = meta["out_dim"], meta["R2"]

    t = timestep.reshape(-1).astype(jnp.float32)
    N = t.shape[0]
    vc = vector_conditioning.astype(jnp.float32).reshape(N, P)

    # Batch row-tile: big tiles amortize the ~0.35us/grid-step overhead
    # (v5e/v6e), but keep >= 2 grid steps for large batches so the "parallel"
    # axis can shard across both v7x TensorCores.
    n8 = _round_up(N, 8)
    tile = min(n8, 1024)
    if n8 >= 512:
        tile = min(tile, _round_up(pl.cdiv(n8, 2), 8))
    n_pad = _round_up(N, tile)

    # One activation slab, [vcond | t] so vcond starts at lane 0.
    act = jnp.concatenate([vc, t[:, None]], axis=-1)
    if n_pad > N:
        act = jnp.pad(act, ((0, n_pad - N), (0, 0)))

    kernel = functools.partial(_adaln_kernel, C=C, D=D, P=P, half=half,
                               D_pad=D_pad, W_lin=W_lin, R2=R2)
    grid = (n_pad // tile,)
    out_width = W_lin + D_pad

    flops = 2 * n_pad * ((C + P) * 2 * D + 2 * D * D_pad + D_pad * W_lin)
    transcendentals = n_pad * (C + 2 * D + D_pad)
    bytes_accessed = (4 * act.size + 2 * packed["w_small"].size
                      + 2 * packed["lin_w"].size + 4 * packed["consts"].size
                      + 4 * n_pad * out_width)

    def _call(weight_pipeline_mode):
        wkw = ({} if weight_pipeline_mode is None
               else dict(pipeline_mode=weight_pipeline_mode))
        return pl.pallas_call(
            kernel,
            out_shape=jax.ShapeDtypeStruct((n_pad, out_width), jnp.float32),
            grid=grid,
            in_specs=[
                pl.BlockSpec((tile, P + 1), lambda i: (i, 0)),            # act
                pl.BlockSpec(packed["w_small"].shape, lambda i: (0, 0), **wkw),
                pl.BlockSpec(packed["lin_w"].shape, lambda i: (0, 0), **wkw),
                pl.BlockSpec(packed["consts"].shape, lambda i: (0, 0), **wkw),
            ],
            out_specs=pl.BlockSpec((tile, out_width), lambda i: (i, 0)),
            compiler_params=pltpu.CompilerParams(
                dimension_semantics=("parallel",)),
            cost_estimate=pl.CostEstimate(flops=flops,
                                          transcendentals=transcendentals,
                                          bytes_accessed=bytes_accessed),
        )(act, packed["w_small"], packed["lin_w"], packed["consts"])

    try:
        # Grid-invariant weights never need double buffering; Buffered(1)
        # halves resident-weight VMEM at real PixArt dims.
        slab = _call(pl.Buffered(buffer_count=1))
    except Exception:  # pragma: no cover - jax without pipeline_mode support
        slab = _call(None)

    return slab[:N, :out_dim], slab[:N, W_lin:W_lin + D]


def ada_layer_norm_single_ref(timestep, vector_conditioning, params,
                              mxu_dtype=jnp.float32):
    """Pure-JAX reference of the same forward (for correctness check).

    With mxu_dtype=bf16 the matmul inputs are cast exactly like the kernel does
    (f32 accumulation), giving a tight apples-to-apples comparison.
    """
    p = params
    C = p["te_w1"].shape[0]
    half = C // 2
    t = timestep.reshape(-1).astype(jnp.float32)
    exponent = -jnp.log(10000.0) * jnp.arange(half, dtype=jnp.float32) / half
    freqs = jnp.exp(exponent)
    args = t[:, None] * freqs[None, :]
    tproj = jnp.concatenate([jnp.cos(args), jnp.sin(args)], axis=-1)

    silu = lambda x: x * jax.nn.sigmoid(x)

    def mm(x, w):
        return jnp.dot(x.astype(mxu_dtype), w.astype(mxu_dtype),
                       preferred_element_type=jnp.float32)

    emb = mm(silu(mm(tproj, p["te_w1"]) + p["te_b1"]), p["te_w2"]) + p["te_b2"]
    emb = emb + (mm(silu(mm(vector_conditioning.astype(jnp.float32), p["ae_w1"])
                         + p["ae_b1"]), p["ae_w2"]) + p["ae_b2"])
    out = mm(silu(emb), p["lin_w"]) + p["lin_b"]
    return out, emb


def init_params(key, time_embed_dim=32, num_channels=256, proj_class_dim=16):
    D, C, P = time_embed_dim, num_channels, proj_class_dim
    ks = jax.random.split(key, 10)
    s = 0.02
    return {
        # timestep_embedder: Linear(C, D) -> SiLU -> Linear(D, D)
        "te_w1": s * jax.random.normal(ks[0], (C, D), jnp.float32),
        "te_b1": s * jax.random.normal(ks[1], (1, D), jnp.float32),
        "te_w2": s * jax.random.normal(ks[2], (D, D), jnp.float32),
        "te_b2": s * jax.random.normal(ks[3], (1, D), jnp.float32),
        # add_embedding: Linear(P, D) -> SiLU -> Linear(D, D)
        "ae_w1": s * jax.random.normal(ks[4], (P, D), jnp.float32),
        "ae_b1": s * jax.random.normal(ks[5], (1, D), jnp.float32),
        "ae_w2": s * jax.random.normal(ks[6], (D, D), jnp.float32),
        "ae_b2": s * jax.random.normal(ks[7], (1, D), jnp.float32),
        # final: Linear(D, 6*D)
        "lin_w": s * jax.random.normal(ks[8], (D, 6 * D), jnp.float32),
        "lin_b": s * jax.random.normal(ks[9], (1, 6 * D), jnp.float32),
    }


if __name__ == "__main__":
    key = jax.random.PRNGKey(0)
    k_p, k_t, k_v = jax.random.split(key, 3)

    time_embed_dim = 32
    num_channels = 256
    proj_class_dim = 16
    batch = 2

    params = init_params(k_p, time_embed_dim, num_channels, proj_class_dim)
    packed, meta = pack_adaln_params(params)

    timestep = jax.random.uniform(k_t, (batch,), jnp.float32, 0.0, 1000.0)
    vector_conditioning = jax.random.normal(k_v, (batch, proj_class_dim), jnp.float32)

    out, emb = ada_layer_norm_single(timestep, vector_conditioning, packed, meta)
    out = jax.block_until_ready(out)
    emb = jax.block_until_ready(emb)

    # Tight check vs. a reference using the same bf16-matmul / f32-accumulate
    # precision; loose sanity check vs. the pure-f32 reference.
    out_bf, emb_bf = ada_layer_norm_single_ref(
        timestep, vector_conditioning, params, mxu_dtype=jnp.bfloat16)
    out_f32, emb_f32 = ada_layer_norm_single_ref(
        timestep, vector_conditioning, params, mxu_dtype=jnp.float32)

    assert out.shape == (batch, 6 * time_embed_dim)
    assert emb.shape == (batch, time_embed_dim)
    assert jnp.allclose(emb, emb_bf, rtol=2e-3, atol=1e-3)
    assert jnp.allclose(out, out_bf, rtol=2e-3, atol=1e-3)
    assert jnp.allclose(emb, emb_f32, rtol=3e-2, atol=1e-2)
    assert jnp.allclose(out, out_f32, rtol=3e-2, atol=1e-2)

    # TODO(synk): use_concat_conditioning=True path (ModuleList of per-chunk
    # TimestepEmbeddings) not exercised; same block-diagonal fusion with
    # per-chunk ae_w1/ae_w2 blocks along the 2D / D lanes.
    print("KERNEL_OK")
</pallas_src>

<mosaic_0001>
module attributes {stable_mosaic.version = 11 : i64} {
  func.func @_adaln_kernel(%arg0: i32, %arg1: memref<8x17xf32, #tpu.memory_space<vmem>>, %arg2: memref<336x128xbf16, #tpu.memory_space<vmem>>, %arg3: memref<128x256xbf16, #tpu.memory_space<vmem>>, %arg4: memref<8x256xf32, #tpu.memory_space<vmem>>, %arg5: memref<8x384xf32, #tpu.memory_space<vmem>>) attributes {dimension_semantics = [#tpu.dimension_semantics<parallel>], iteration_bounds = array<i64: 1>, scalar_prefetch = 0 : i64, scratch_operands = 0 : i64, tpu.core_type = #tpu.core_type<tc>, window_params = [{transform_indices = @transform_0, window_bounds = array<i64: 8, 17>}, {pipeline_mode = #tpu.pipeline_mode<synchronous>, transform_indices = @transform_1, window_bounds = array<i64: 336, 128>}, {pipeline_mode = #tpu.pipeline_mode<synchronous>, transform_indices = @transform_2, window_bounds = array<i64: 128, 256>}, {pipeline_mode = #tpu.pipeline_mode<synchronous>, transform_indices = @transform_3, window_bounds = array<i64: 8, 256>}, {transform_indices = @transform_4, window_bounds = array<i64: 8, 384>}]} {
    %c0 = arith.constant 0 : index
    %c0_0 = arith.constant 0 : index
    %0 = vector.load %arg1[%c0, %c0_0] : memref<8x17xf32, #tpu.memory_space<vmem>>, vector<8x16xf32>
    %c0_1 = arith.constant 0 : index
    %c16 = arith.constant 16 : index
    %1 = vector.load %arg1[%c0_1, %c16] : memref<8x17xf32, #tpu.memory_space<vmem>>, vector<8x1xf32>
    %c3 = arith.constant 3 : index
    %c0_2 = arith.constant 0 : index
    %2 = vector.load %arg4[%c3, %c0_2] : memref<8x256xf32, #tpu.memory_space<vmem>>, vector<1x128xf32>
    %3 = vector.broadcast %1 : vector<8x1xf32> to vector<8x128xf32>
    %4 = vector.broadcast %2 : vector<1x128xf32> to vector<8x128xf32>
    %5 = arith.mulf %3, %4 : vector<8x128xf32>
    %6 = math.cos %5 : vector<8x128xf32>
    %7 = math.sin %5 : vector<8x128xf32>
    %8 = tpu.concatenate %6, %7, %0 in 1 : vector<8x128xf32>, vector<8x128xf32>, vector<8x16xf32> -> vector<8x272xf32>
    %9 = arith.truncf %8 : vector<8x272xf32> to vector<8x272xbf16>
    %c0_3 = arith.constant 0 : index
    %c0_4 = arith.constant 0 : index
    %10 = vector.load %arg2[%c0_3, %c0_4] : memref<336x128xbf16, #tpu.memory_space<vmem>>, vector<272x64xbf16>
    %cst = arith.constant dense<0.000000e+00> : vector<8x64xf32>
    %11 = tpu.matmul %9, %10, %cst {dimension_numbers = #tpu.dot_dimension_numbers<[1], [0], [0], [1], [0, 0, 1, 1], [], []>} : vector<8x272xbf16>, vector<272x64xbf16>, vector<8x64xf32> -> vector<8x64xf32>
    %c0_5 = arith.constant 0 : index
    %c0_6 = arith.constant 0 : index
    %12 = vector.load %arg4[%c0_5, %c0_6] : memref<8x256xf32, #tpu.memory_space<vmem>>, vector<1x64xf32>
    %13 = vector.broadcast %12 : vector<1x64xf32> to vector<8x64xf32>
    %14 = arith.addf %11, %13 : vector<8x64xf32>
    %15 = arith.negf %14 : vector<8x64xf32>
    %16 = math.exp %15 : vector<8x64xf32>
    %cst_7 = arith.constant 1.000000e+00 : f32
    %17 = vector.broadcast %cst_7 : f32 to vector<8x64xf32>
    %18 = arith.addf %17, %16 : vector<8x64xf32>
    %19 = arith.divf %17, %18 : vector<8x64xf32>
    %20 = arith.mulf %14, %19 : vector<8x64xf32>
    %21 = arith.truncf %20 : vector<8x64xf32> to vector<8x64xbf16>
    %c272 = arith.constant 272 : index
    %c0_8 = arith.constant 0 : index
    %22 = vector.load %arg2[%c272, %c0_8] : memref<336x128xbf16, #tpu.memory_space<vmem>>, vector<64x128xbf16>
    %cst_9 = arith.constant dense<0.000000e+00> : vector<8x128xf32>
    %23 = tpu.matmul %21, %22, %cst_9 {dimension_numbers = #tpu.dot_dimension_numbers<[1], [0], [0], [1], [0, 0, 1, 1], [], []>} : vector<8x64xbf16>, vector<64x128xbf16>, vector<8x128xf32> -> vector<8x128xf32>
    %c1 = arith.constant 1 : index
    %c0_10 = arith.constant 0 : index
    %24 = vector.load %arg4[%c1, %c0_10] : memref<8x256xf32, #tpu.memory_space<vmem>>, vector<1x128xf32>
    %25 = vector.broadcast %24 : vector<1x128xf32> to vector<8x128xf32>
    %26 = arith.addf %23, %25 : vector<8x128xf32>
    %27 = arith.negf %26 : vector<8x128xf32>
    %28 = math.exp %27 : vector<8x128xf32>
    %cst_11 = arith.constant 1.000000e+00 : f32
    %29 = vector.broadcast %cst_11 : f32 to vector<8x128xf32>
    %30 = arith.addf %29, %28 : vector<8x128xf32>
    %31 = arith.divf %29, %30 : vector<8x128xf32>
    %32 = arith.mulf %26, %31 : vector<8x128xf32>
    %33 = arith.truncf %32 : vector<8x128xf32> to vector<8x128xbf16>
    %c0_12 = arith.constant 0 : index
    %c0_13 = arith.constant 0 : index
    %34 = vector.load %arg3[%c0_12, %c0_13] : memref<128x256xbf16, #tpu.memory_space<vmem>>, vector<128x256xbf16>
    %cst_14 = arith.constant dense<0.000000e+00> : vector<8x256xf32>
    %35 = tpu.matmul %33, %34, %cst_14 {dimension_numbers = #tpu.dot_dimension_numbers<[1], [0], [0], [1], [0, 0, 1, 1], [], []>} : vector<8x128xbf16>, vector<128x256xbf16>, vector<8x256xf32> -> vector<8x256xf32>
    %c2 = arith.constant 2 : index
    %c0_15 = arith.constant 0 : index
    %36 = vector.load %arg4[%c2, %c0_15] : memref<8x256xf32, #tpu.memory_space<vmem>>, vector<1x256xf32>
    %37 = vector.broadcast %36 : vector<1x256xf32> to vector<8x256xf32>
    %38 = arith.addf %35, %37 : vector<8x256xf32>
    %c0_16 = arith.constant 0 : index
    %c0_17 = arith.constant 0 : index
    %39 = vector.load %arg5[%c0_16, %c0_17] : memref<8x384xf32, #tpu.memory_space<vmem>>, vector<8x256xf32>
    tpu.vector_store %arg5[%c0_16, %c0_17], %38 {strides = array<i32>} : memref<8x384xf32, #tpu.memory_space<vmem>>, vector<8x256xf32>,
    %c0_18 = arith.constant 0 : index
    %c256 = arith.constant 256 : index
    %40 = vector.load %arg5[%c0_18, %c256] : memref<8x384xf32, #tpu.memory_space<vmem>>, vector<8x128xf32>
    tpu.vector_store %arg5[%c0_18, %c256], %26 {strides = array<i32>} : memref<8x384xf32, #tpu.memory_space<vmem>>, vector<8x128xf32>,
    return
  }
  func.func @transform_0(%arg0: i32) -> (i32, i32) {
    %c0_i32 = arith.constant 0 : i32
    %c0_i32_0 = arith.constant 0 : i32
    return %arg0, %c0_i32 : i32, i32
  }
  func.func @transform_1(%arg0: i32) -> (i32, i32) {
    %c0_i32 = arith.constant 0 : i32
    %c0_i32_0 = arith.constant 0 : i32
    %c0_i32_1 = arith.constant 0 : i32
    return %c0_i32, %c0_i32_0 : i32, i32
  }
  func.func @transform_2(%arg0: i32) -> (i32, i32) {
    %c0_i32 = arith.constant 0 : i32
    %c0_i32_0 = arith.constant 0 : i32
    %c0_i32_1 = arith.constant 0 : i32
    return %c0_i32, %c0_i32_0 : i32, i32
  }
  func.func @transform_3(%arg0: i32) -> (i32, i32) {
    %c0_i32 = arith.constant 0 : i32
    %c0_i32_0 = arith.constant 0 : i32
    %c0_i32_1 = arith.constant 0 : i32
    return %c0_i32, %c0_i32_0 : i32, i32
  }
  func.func @transform_4(%arg0: i32) -> (i32, i32) {
    %c0_i32 = arith.constant 0 : i32
    %c0_i32_0 = arith.constant 0 : i32
    return %arg0, %c0_i32 : i32, i32
  }
}

module attributes {stable_mosaic.version = 11 : i64} {
  func.func @_adaln_kernel(%arg0: i32, %arg1: memref<8x17xf32, #tpu.memory_space<vmem>>, %arg2: memref<336x128xbf16, #tpu.memory_space<vmem>>, %arg3: memref<128x256xbf16, #tpu.memory_space<vmem>>, %arg4: memref<8x256xf32, #tpu.memory_space<vmem>>, %arg5: memref<8x384xf32, #tpu.memory_space<vmem>>) attributes {dimension_semantics = [#tpu.dimension_semantics<parallel>], iteration_bounds = array<i64: 1>, scalar_prefetch = 0 : i64, scratch_operands = 0 : i64, tpu.core_type = #tpu.core_type<tc>, window_params = [{transform_indices = @transform_0, window_bounds = array<i64: 8, 17>}, {pipeline_mode = #tpu.pipeline_mode<synchronous>, transform_indices = @transform_1, window_bounds = array<i64: 336, 128>}, {pipeline_mode = #tpu.pipeline_mode<synchronous>, transform_indices = @transform_2, window_bounds = array<i64: 128, 256>}, {pipeline_mode = #tpu.pipeline_mode<synchronous>, transform_indices = @transform_3, window_bounds = array<i64: 8, 256>}, {transform_indices = @transform_4, window_bounds = array<i64: 8, 384>}]} {
    %c0 = arith.constant 0 : index
    %c0_0 = arith.constant 0 : index
    %0 = vector.load %arg1[%c0, %c0_0] : memref<8x17xf32, #tpu.memory_space<vmem>>, vector<8x16xf32>
    %c0_1 = arith.constant 0 : index
    %c16 = arith.constant 16 : index
    %1 = vector.load %arg1[%c0_1, %c16] : memref<8x17xf32, #tpu.memory_space<vmem>>, vector<8x1xf32>
    %c3 = arith.constant 3 : index
    %c0_2 = arith.constant 0 : index
    %2 = vector.load %arg4[%c3, %c0_2] : memref<8x256xf32, #tpu.memory_space<vmem>>, vector<1x128xf32>
    %3 = vector.broadcast %1 : vector<8x1xf32> to vector<8x128xf32>
    %4 = vector.broadcast %2 : vector<1x128xf32> to vector<8x128xf32>
    %5 = arith.mulf %3, %4 : vector<8x128xf32>
    %6 = math.cos %5 : vector<8x128xf32>
    %7 = math.sin %5 : vector<8x128xf32>
    %8 = tpu.concatenate %6, %7, %0 in 1 : vector<8x128xf32>, vector<8x128xf32>, vector<8x16xf32> -> vector<8x272xf32>
    %9 = arith.truncf %8 : vector<8x272xf32> to vector<8x272xbf16>
    %c0_3 = arith.constant 0 : index
    %c0_4 = arith.constant 0 : index
    %10 = vector.load %arg2[%c0_3, %c0_4] : memref<336x128xbf16, #tpu.memory_space<vmem>>, vector<272x64xbf16>
    %cst = arith.constant dense<0.000000e+00> : vector<8x64xf32>
    %11 = tpu.matmul %9, %10, %cst {dimension_numbers = #tpu.dot_dimension_numbers<[1], [0], [0], [1], [0, 0, 1, 1], [], []>} : vector<8x272xbf16>, vector<272x64xbf16>, vector<8x64xf32> -> vector<8x64xf32>
    %c0_5 = arith.constant 0 : index
    %c0_6 = arith.constant 0 : index
    %12 = vector.load %arg4[%c0_5, %c0_6] : memref<8x256xf32, #tpu.memory_space<vmem>>, vector<1x64xf32>
    %13 = vector.broadcast %12 : vector<1x64xf32> to vector<8x64xf32>
    %14 = arith.addf %11, %13 : vector<8x64xf32>
    %15 = arith.negf %14 : vector<8x64xf32>
    %16 = math.exp %15 : vector<8x64xf32>
    %cst_7 = arith.constant 1.000000e+00 : f32
    %17 = vector.broadcast %cst_7 : f32 to vector<8x64xf32>
    %18 = arith.addf %17, %16 : vector<8x64xf32>
    %19 = arith.divf %17, %18 : vector<8x64xf32>
    %20 = arith.mulf %14, %19 : vector<8x64xf32>
    %21 = arith.truncf %20 : vector<8x64xf32> to vector<8x64xbf16>
    %c272 = arith.constant 272 : index
    %c0_8 = arith.constant 0 : index
    %22 = vector.load %arg2[%c272, %c0_8] : memref<336x128xbf16, #tpu.memory_space<vmem>>, vector<64x128xbf16>
    %cst_9 = arith.constant dense<0.000000e+00> : vector<8x128xf32>
    %23 = tpu.matmul %21, %22, %cst_9 {dimension_numbers = #tpu.dot_dimension_numbers<[1], [0], [0], [1], [0, 0, 1, 1], [], []>} : vector<8x64xbf16>, vector<64x128xbf16>, vector<8x128xf32> -> vector<8x128xf32>
    %c1 = arith.constant 1 : index
    %c0_10 = arith.constant 0 : index
    %24 = vector.load %arg4[%c1, %c0_10] : memref<8x256xf32, #tpu.memory_space<vmem>>, vector<1x128xf32>
    %25 = vector.broadcast %24 : vector<1x128xf32> to vector<8x128xf32>
    %26 = arith.addf %23, %25 : vector<8x128xf32>
    %27 = arith.negf %26 : vector<8x128xf32>
    %28 = math.exp %27 : vector<8x128xf32>
    %cst_11 = arith.constant 1.000000e+00 : f32
    %29 = vector.broadcast %cst_11 : f32 to vector<8x128xf32>
    %30 = arith.addf %29, %28 : vector<8x128xf32>
    %31 = arith.divf %29, %30 : vector<8x128xf32>
    %32 = arith.mulf %26, %31 : vector<8x128xf32>
    %33 = arith.truncf %32 : vector<8x128xf32> to vector<8x128xbf16>
    %c0_12 = arith.constant 0 : index
    %c0_13 = arith.constant 0 : index
    %34 = vector.load %arg3[%c0_12, %c0_13] : memref<128x256xbf16, #tpu.memory_space<vmem>>, vector<128x256xbf16>
    %cst_14 = arith.constant dense<0.000000e+00> : vector<8x256xf32>
    %35 = tpu.matmul %33, %34, %cst_14 {dimension_numbers = #tpu.dot_dimension_numbers<[1], [0], [0], [1], [0, 0, 1, 1], [], []>} : vector<8x128xbf16>, vector<128x256xbf16>, vector<8x256xf32> -> vector<8x256xf32>
    %c2 = arith.constant 2 : index
    %c0_15 = arith.constant 0 : index
    %36 = vector.load %arg4[%c2, %c0_15] : memref<8x256xf32, #tpu.memory_space<vmem>>, vector<1x256xf32>
    %37 = vector.broadcast %36 : vector<1x256xf32> to vector<8x256xf32>
    %38 = arith.addf %35, %37 : vector<8x256xf32>
    %c0_16 = arith.constant 0 : index
    %c0_17 = arith.constant 0 : index
    %39 = vector.load %arg5[%c0_16, %c0_17] : memref<8x384xf32, #tpu.memory_space<vmem>>, vector<8x256xf32>
    tpu.vector_store %arg5[%c0_16, %c0_17], %38 {strides = array<i32>} : memref<8x384xf32, #tpu.memory_space<vmem>>, vector<8x256xf32>,
    %c0_18 = arith.constant 0 : index
    %c256 = arith.constant 256 : index
    %40 = vector.load %arg5[%c0_18, %c256] : memref<8x384xf32, #tpu.memory_space<vmem>>, vector<8x128xf32>
    tpu.vector_store %arg5[%c0_18, %c256], %26 {strides = array<i32>} : memref<8x384xf32, #tpu.memory_space<vmem>>, vector<8x128xf32>,
    return
  }
  func.func @transform_0(%arg0: i32) -> (i32, i32) {
    %c0_i32 = arith.constant 0 : i32
    %c0_i32_0 = arith.constant 0 : i32
    return %arg0, %c0_i32 : i32, i32
  }
  func.func @transform_1(%arg0: i32) -> (i32, i32) {
    %c0_i32 = arith.constant 0 : i32
    %c0_i32_0 = arith.constant 0 : i32
    %c0_i32_1 = arith.constant 0 : i32
    return %c0_i32, %c0_i32_0 : i32, i32
  }
  func.func @transform_2(%arg0: i32) -> (i32, i32) {
    %c0_i32 = arith.constant 0 : i32
    %c0_i32_0 = arith.constant 0 : i32
    %c0_i32_1 = arith.constant 0 : i32
    return %c0_i32, %c0_i32_0 : i32, i32
  }
  func.func @transform_3(%arg0: i32) -> (i32, i32) {
    %c0_i32 = arith.constant 0 : i32
    %c0_i32_0 = arith.constant 0 : i32
    %c0_i32_1 = arith.constant 0 : i32
    return %c0_i32, %c0_i32_0 : i32, i32
  }
  func.func @transform_4(%arg0: i32) -> (i32, i32) {
    %c0_i32 = arith.constant 0 : i32
    %c0_i32_0 = arith.constant 0 : i32
    return %arg0, %c0_i32 : i32, i32
  }
}

</mosaic_0001>

<bundles_post_ra>
// kernel: tpu_custom_call.1
= control target key start
LH: loop header
LB: loop body
LE: loop exit
PB: predicated region body
PF: predicated region fallthrough
CT: control target
= control target key end

     0   :  { %9 = vsyncpa [#allocation3], 0  ;;  %s1206_s0 = inlined_call_operand.hbm [shape: f32[8,17], index: 0, kind: input, shape index: {}]   ;;  %s1207_s1 = inlined_call_operand.hbm [shape: bf16[336,128], index: 1, kind: input, shape index: {}]   ;;  %s1208_s2 = inlined_call_operand.hbm [shape: bf16[128,256], index: 2, kind: input, shape index: {}]   ;;  %s1209_s3 = inlined_call_operand.hbm [shape: f32[8,256], index: 3, kind: input, shape index: {}]   ;;  %s1210_s4 = inlined_call_operand.hbm [shape: f32[8,384], index: 4, kind: output, shape index: {}]  }
   0x1   :  { %10 = vsyncpa [#allocation6], 0 }
   0x2   :  { %11 = vsyncpa [#allocation9], 0 }
   0x3   :  { %12 = vsyncpa [#allocation4], 0  ;;  %s1067_s15 = smov [#allocation5]   ;;  %s949_s19 = scalar_lea.hbm %s1207_s1, 2688 }
   0x4   :  { %s28_s16 = sshll.u32 %s1067_s15, 4  ;;  %p950_p0 = scmp.ne.s32.totalorder %s1207_s1, %s949_s19  ;;  %s29_s16 = int_to_ptr.vmem [resolvable:$true] %s28_s16 }
   0x5   :  { %p953_p1 = scmp.lt.u32.totalorder %s949_s19, %s1207_s1 }
   0x7   :  { %p955_p2 = pnand %p953_p1, %p950_p0 }
   0x9   :  { %958 = shalt.err (!%p955_p2)
}
   0xa   :  { %s959_s24 = scalar_lea.vmem %s29_s16, 2688  ;;  %p964_p4 = scmp.lt.s32.totalorder %s29_s16, %s29_s16 }
   0xb   :  { %p960_p3 = scmp.ne.s32.totalorder %s29_s16, %s959_s24  ;;  %p965_p5 = scmp.lt.s32.totalorder %s959_s24, %s959_s24 }
   0xd   :  { %p966_p6 = por %p965_p5, %p964_p4 }
   0xf   :  { %p967_p7 = pnand %p966_p6, %p960_p3 }
  0x11   :  { %970 = shalt.err (!%p967_p7)
}
  0x12   :  { %s1068_s25 = smov 64   ;;  %s1069_s26 = smov 4  }
  0x13   :  { %34 = dma.hbm_to_vmem [thread:$0]  %s1207_s1, 2688, %s29_s16, [#allocation6], %s1068_s25, %s1068_s25, %s1069_s26  }
  0x14   :  { %s1070_s29 = smov [#allocation2]   ;;  %s1071_s5 = smov [#allocation7]  }
  0x15   :  { %s19_s30 = sshll.u32 %s1070_s29, 4  ;;  %s40_s6 = sshll.u32 %s1071_s5, 4  ;;  %s20_s30 = int_to_ptr.vmem [resolvable:$true] %s19_s30  ;;  %s41_s6 = int_to_ptr.vmem [resolvable:$true] %s40_s6 }
  0x16   :  { %s971_s9 = scalar_lea.hbm %s1206_s0, 128 }
  0x17   :  { %p972_p8 = scmp.ne.s32.totalorder %s1206_s0, %s971_s9  ;;  %p975_p9 = scmp.lt.u32.totalorder %s971_s9, %s1206_s0 }
  0x19   :  { %p977_p10 = pnand %p975_p9, %p972_p8 }
  0x1b   :  { %980 = shalt.err (!%p977_p10)
}
  0x1c   :  { %s981_s1 = scalar_lea.vmem %s20_s30, 128  ;;  %p986_p12 = scmp.lt.s32.totalorder %s20_s30, %s20_s30 }
  0x1d   :  { %p982_p11 = scmp.ne.s32.totalorder %s20_s30, %s981_s1  ;;  %p987_p13 = scmp.lt.s32.totalorder %s981_s1, %s981_s1 }
  0x1f   :  { %p988_p0 = por %p987_p13, %p986_p12 }
  0x21   :  { %p989_p1 = pnand %p988_p0, %p982_p11 }
  0x23   :  { %992 = shalt.err (!%p989_p1)
}
  0x24   :  { %22 = dma.hbm_to_vmem [thread:$0]  %s1206_s0, 128, %s20_s30, [#allocation3]  }
  0x25   :  { %s993_s18 = scalar_lea.hbm %s1208_s2, 2048 }
  0x26   :  { %p994_p2 = scmp.ne.s32.totalorder %s1208_s2, %s993_s18  ;;  %p997_p3 = scmp.lt.u32.totalorder %s993_s18, %s1208_s2 }
  0x28   :  { %p999_p4 = pnand %p997_p3, %p994_p2 }
  0x2a   :  { %1002 = shalt.err (!%p999_p4)
}
  0x2b   :  { %s1003_s23 = scalar_lea.vmem %s41_s6, 2048  ;;  %p1008_p6 = scmp.lt.s32.totalorder %s41_s6, %s41_s6 }
  0x2c   :  { %p1004_p5 = scmp.ne.s32.totalorder %s41_s6, %s1003_s23  ;;  %p1009_p7 = scmp.lt.s32.totalorder %s1003_s23, %s1003_s23 }
  0x2e   :  { %p1010_p8 = por %p1009_p7, %p1008_p6 }
  0x30   :  { %p1011_p9 = pnand %p1010_p8, %p1004_p5 }
  0x32   :  { %1014 = shalt.err (!%p1011_p9)
}
  0x33   :  { %s1072_s0 = smov 128   ;;  %s1073_s24 = smov 8  }
  0x34   :  { %46 = dma.hbm_to_vmem [thread:$0]  %s1208_s2, 2048, %s41_s6, [#allocation6], %s1072_s0, %s1072_s0, %s1073_s24  }
  0x35   :  { %s1074_s27 = smov [#allocation8]   ;;  %s1015_s5 = scalar_lea.hbm %s1209_s3, 256 }
  0x36   :  { %s53_s28 = sshll.u32 %s1074_s27, 4  ;;  %p1016_p10 = scmp.ne.s32.totalorder %s1209_s3, %s1015_s5  ;;  %s54_s28 = int_to_ptr.vmem [resolvable:$true] %s53_s28 }
  0x37   :  { %p1019_p11 = scmp.lt.u32.totalorder %s1015_s5, %s1209_s3 }
  0x39   :  { %p1021_p12 = pnand %p1019_p11, %p1016_p10 }
  0x3b   :  { %1024 = shalt.err (!%p1021_p12)
}
  0x3c   :  { %s1025_s11 = scalar_lea.vmem %s54_s28, 256  ;;  %p1030_p0 = scmp.lt.s32.totalorder %s54_s28, %s54_s28 }
  0x3d   :  { %p1026_p13 = scmp.ne.s32.totalorder %s54_s28, %s1025_s11  ;;  %p1031_p1 = scmp.lt.s32.totalorder %s1025_s11, %s1025_s11 }
  0x3f   :  { %p1032_p2 = por %p1031_p1, %p1030_p0 }
  0x41   :  { %p1033_p3 = pnand %p1032_p2, %p1026_p13 }
  0x43   :  { %1036 = shalt.err (!%p1033_p3)
}
  0x44   :  { %56 = dma.hbm_to_vmem [thread:$0]  %s1209_s3, 256, %s54_s28, [#allocation9]  }
  0x45   :  { %1059 = dma.done.wait [#allocation3], 128  }
  0x46   :  { %1060 = vsyncadd [#allocation3], 4294967168 }
  0x47   :  { %1061 = dma.done.wait [#allocation6], 4736  }
  0x48   :  { %1062 = vsyncadd [#allocation6], 4294962560 }
  0x49   :  { %1063 = dma.done.wait [#allocation9], 256  }
  0x4a   :  { %1064 = vsyncadd [#allocation9], 4294967040  ;;  %v1075_v0 = vmov 16   ;;  %v1159_v1 = vld [vmem:[#allocation2] sm:$0xff]  ;;  %v892_v2 = vld [vmem:[#allocation5 + $0x40] sm:$0xff]   ;;  %v1076_v18 = vmov 0.0  }
  0x4b   :  { %891 = vset.pattern.permute.xlu0 %v1075_v0  ;;  %v893_v3 = vld [vmem:[#allocation5] sm:$0xff]   ;;  %v894_v4 = vld [vmem:[#allocation5 + $0x48] sm:$0xff]   ;;  %821 = vmatprep.subr.bf16.mxu0 %v892_v2  ;;  %v896_v6 = vld [vmem:[#allocation5 + $0x50] sm:$0xff]   ;;  %vm1077_vm0 = vmmov 0   ;;  %v1078_v33 = vmov 2102212464  }
  0x4c   :  { %74 = vperm.xlu0 %891, %v1159_v1   ;;  %822 = vmatpush3.bf16.msra.mxu0 %v893_v3  ;;  %v895_v5 = vld [vmem:[#allocation5 + $0x8] sm:$0xff]   ;;  %v897_v7 = vld [vmem:[#allocation5 + $0x10] sm:$0xff]   ;;  %v898_v8 = vld [vmem:[#allocation5 + $0x58] sm:$0xff]   ;;  %v1079_v35 = vmov 920167782   ;;  %s1085_s3 = smov [#allocation10]  }
  0x4d   :  { %823 = vmatprep.subr.bf16.mxu0 %v894_v4  ;;  %v899_v9 = vld [vmem:[#allocation5 + $0x18] sm:$0xff]   ;;  %v900_v10 = vld [vmem:[#allocation5 + $0x60] sm:$0xff]   ;;  %v902_v12 = vld [vmem:[#allocation5 + $0x68] sm:$0xff]   ;;  %856 = vmatprep.subr.bf16.mxu1 %v1076_v18  ;;  %v1080_v39 = vmov 1326507024   ;;  %s761_s12 = sshll.u32 %s1085_s3, 4  ;;  %s762_s12 = int_to_ptr.vmem [resolvable:$true] %s761_s12 }
  0x4e   :  { %v901_v11 = vld [vmem:[#allocation5 + $0x20] sm:$0xff]   ;;  %v903_v13 = vld [vmem:[#allocation5 + $0x28] sm:$0xff]   ;;  %v904_v14 = vld [vmem:[#allocation5 + $0x70] sm:$0xff]   ;;  %864 = vmatprep.mubr.msk.bf16.mxu1 %vm1077_vm0, %v1076_v18  ;;  %v1081_v41 = vmov 683565275   ;;  %s1037_s13 = scalar_lea.vmem %s762_s12, 384  ;;  %p1042_p5 = scmp.lt.s32.totalorder %s762_s12, %s762_s12 }
  0x4f   :  { %v905_v15 = vld [vmem:[#allocation5 + $0x30] sm:$0xff]   ;;  %v906_v16 = vld [vmem:[#allocation5 + $0x78] sm:$0xff]   ;;  %v71_v19 = vld [vmem:[#allocation8 + $0x3] ss:$0 sm:$0xff]  ;;  %v1082_v43 = vmov 2475754826   ;;  %p1038_p4 = scmp.ne.s32.totalorder %s762_s12, %s1037_s13  ;;  %p1043_p6 = scmp.lt.s32.totalorder %s1037_s13, %s1037_s13 }
  0x50   :  { %824 = vmatpush3.bf16.msra.mxu0 %v895_v5  ;;  %v907_v17 = vld [vmem:[#allocation5 + $0x38] sm:$0xff]   ;;  %v1083_v46 = vmov 2131351028  }
  0x51   :  { %825 = vmatprep.subr.bf16.mxu0 %v896_v6  ;;  %p1044_p7 = por %p1043_p6, %p1042_p5 }
  0x53   :  { %p1045_p8 = pnand %p1044_p7, %p1038_p4 }
  0x54   :  { %826 = vmatpush3.bf16.msra.mxu0 %v897_v7 }
  0x55   :  { %827 = vmatprep.subr.bf16.mxu0 %v898_v8 }
  0x58   :  { %828 = vmatpush3.bf16.msra.mxu0 %v899_v9 }
  0x59   :  { %829 = vmatprep.subr.bf16.mxu0 %v900_v10 }
  0x5c   :  { %830 = vmatpush3.bf16.msra.mxu0 %v901_v11 }
  0x5d   :  { %831 = vmatprep.subr.bf16.mxu0 %v902_v12 }
  0x60   :  { %832 = vmatpush3.bf16.msra.mxu0 %v903_v13 }
  0x61   :  { %833 = vmatprep.subr.bf16.mxu0 %v904_v14 }
  0x64   :  { %834 = vmatpush3.bf16.msra.mxu0 %v905_v15 }
  0x65   :  { %835 = vmatprep.subr.bf16.mxu0 %v906_v16 }
  0x68   :  { %836 = vmatpush3.bf16.msra.mxu0 %v907_v17 }
  0x69   :  { %850 = vmatprep.subr.bf16.mxu0 %v1076_v18 }
  0xcb   :  { %v75_v20 = vpop.permute.xlu0 %74 }
  0xcc   :  { %v1166_v21 = vmul.f32 %v75_v20, %v71_v19 }
  0xce   :  { %v81_v22 = vand.u32 2139095040, %v1166_v21  ;;  %v78_v23 = vand.u32 2147483647, %v1166_v21  ;;  %vm80_vm8 = vcmp.lt.s32.totalorder %v1166_v21, 0 }
  0xd0   :  { %v82_v24 = vshrl.u32 %v81_v22, 23  ;;  %v85_v26 = vand.u32 8388607, %v78_v23  ;;  %vm79_vm9 = vcmp.le.f32.partialorder %v78_v23, 0.7853982 }
  0xd2   :  { %v772_v25 = vadd.s32 4294967169, %v82_v24  ;;  %v86_v29 = vor.u32 8388608, %v85_v26 }
  0xd4   :  { %v88_v27 = vadd.s32 1, %v772_v25  ;;  %v126_v37 = vshll.u32 %v86_v29, 8 }
  0xd6   :  { %vm89_vm1 = vcmp.gt.s32.totalorder %v88_v27, 0 }
  0xd7   :  { %v90_v28 = vsel %vm89_vm1, %v88_v27, 0  ;;  %vm170_vm1 = vweird.f32 %v1166_v21 }
  0xd8   :  { %v92_v30 = vand.u32 31, %v90_v28  ;;  %v91_v31 = vshrl.u32 %v90_v28, 5 }
  0xda   :  { %v93_v32 = vsub.s32 32, %v92_v30  ;;  %v104_v34 = vshll.u32 %v1078_v33, %v92_v30  ;;  %v107_v36 = vshll.u32 %v1079_v35, %v92_v30  ;;  %v95_v42 = vshll.u32 %v1081_v41, %v92_v30 }
  0xdb   :  { %v98_v45 = vshll.u32 %v1082_v43, %v92_v30  ;;  %v101_v48 = vshll.u32 %v1083_v46, %v92_v30  ;;  %vm113_vm2 = vcmp.lt.s32.totalorder %v91_v31, 4  ;;  %vm110_vm3 = vcmp.lt.s32.totalorder %v91_v31, 1 }
  0xdc   :  { %v105_v38 = vshrl.u32 %v1079_v35, %v93_v32  ;;  %v108_v40 = vshrl.u32 %v1080_v39, %v93_v32  ;;  %v96_v44 = vshrl.u32 %v1082_v43, %v93_v32  ;;  %v99_v47 = vshrl.u32 %v1083_v46, %v93_v32 }
  0xdd   :  { %v102_v49 = vshrl.u32 %v1078_v33, %v93_v32  ;;  %v94_v53 = vshrl.u32 %v1081_v41, %v93_v32  ;;  %vm111_vm4 = vcmp.lt.s32.totalorder %v91_v31, 2  ;;  %vm112_vm5 = vcmp.lt.s32.totalorder %v91_v31, 3 }
  0xde   :  { %v106_v50 = vor.u32 %v105_v38, %v104_v34  ;;  %v109_v51 = vor.u32 %v108_v40, %v107_v36  ;;  %v97_v52 = vor.u32 %v96_v44, %v95_v42  ;;  %v100_v54 = vor.u32 %v99_v47, %v98_v45 }
  0xdf   :  { %v103_v55 = vor.u32 %v102_v49, %v101_v48 }
  0xe0   :  { %v119_v56 = vsel %vm113_vm2, %v106_v50, 920167782  ;;  %v123_v57 = vsel %vm113_vm2, %v109_v51, 1326507024  ;;  %v118_v59 = vsel %vm110_vm3, %v97_v52, %v100_v54  ;;  %v114_v62 = vsel %vm110_vm3, %v94_v53, %v97_v52 }
  0xe1   :  { %v115_v58 = vsel %vm113_vm2, %v103_v55, 2102212464  ;;  %v120_v60 = vsel %vm112_vm5, %v103_v55, %v119_v56  ;;  %v122_v61 = vsel %vm110_vm3, %v100_v54, %v103_v55  ;;  %v124_v2 = vsel %vm112_vm5, %v106_v50, %v123_v57 }
  0xe2   :  { %v116_v63 = vsel %vm112_vm5, %v100_v54, %v115_v58  ;;  %v121_v0 = vsel %vm111_vm4, %v118_v59, %v120_v60  ;;  %v125_v3 = vsel %vm111_vm4, %v122_v61, %v124_v2  ;;  %v908_v59 = vld [vmem:[#allocation5 + $0x80] sm:$0xff]   ;;  %v287_v60 = vpack.c.bf16 %v1159_v1, %v1159_v1  ;;  %v909_v61 = vld [vmem:[#allocation5 + $0x88] sm:$0xff]  }
  0xe3   :  { %v1172_v4 = vmul.u32.u64.low %v126_v37, %v121_v0  ;;  %v1173_v5 = vmul.u32.u64.high %v126_v37, %v121_v0, %v1172_v4  ;;  %v1175_v6 = vmul.u32.u64.low %v126_v37, %v125_v3  ;;  %v1176_v7 = vmul.u32.u64.high %v126_v37, %v125_v3, %v1175_v6  ;;  %857 = vmatpush3.bf16.msra.mxu1 %v909_v61 }
  0xe4   :  { %v117_v8 = vsel %vm111_vm4, %v114_v62, %v116_v63  ;;  %vm425_vm2 = vcmask 130048   ;;  %858 = vmatprep.subr.bf16.mxu1 %v1076_v18  ;;  %v911_v62 = vld [vmem:[#allocation5 + $0x98] sm:$0xff]   ;;  %v912_v63 = vld [vmem:[#allocation5 + $0xa0] sm:$0xff]  }
  0xe5   :  { %v136_v9 = vadd.s32 1, %v1173_v5  ;;  %v133_v10 = vmul.u32 %v126_v37, %v117_v8  ;;  %vm135_vm6 = vc.u32 %v1176_v7, %v1172_v4  ;;  %v134_v25 = vadd.s32 %v1172_v4, %v1176_v7 }
  0xe7   :  { %v137_v11 = vsel %vm135_vm6, %v136_v9, %v1173_v5  ;;  %v322_v5 = vld [vmem:[#allocation8] ss:$0 sm:$0xff] }
  0xe8   :  { %v138_v12 = vadd.s32 %v137_v11, %v133_v10 }
  0xea   :  { %v139_v13 = vadd.s32 536870912, %v138_v12 }
  0xec   :  { %v140_v14 = vshrl.u32 %v139_v13, 30 }
  0xee   :  { %v141_v15 = vshll.u32 %v140_v14, 30  ;;  %v164_v37 = vsub.s32 4, %v140_v14 }
  0xf0   :  { %v142_v16 = vsub.s32 %v138_v12, %v141_v15  ;;  %v165_v40 = vsel %vm80_vm8, %v164_v37, %v140_v14  ;;  %v525_v37 = vld [vmem:[#allocation8 + $0x1] ss:$0 sm:$0xff] }
  0xf1   :  { %v167_v42 = vsel %vm79_vm9, 0, %v165_v40 }
  0xf2   :  { %v144_v17 = vsub.s32 0, %v142_v16  ;;  %v274_v43 = vadd.s32 3, %v167_v42  ;;  %v171_v44 = vand.u32 3, %v167_v42 }
  0xf4   :  { %v773_v19 = vmin.u32 %v144_v17, %v142_v16  ;;  %v275_v45 = vand.u32 3, %v274_v43  ;;  %vm176_vm10 = vcmp.eq.s32.totalorder %v171_v44, 2  ;;  %vm173_vm12 = vcmp.eq.s32.totalorder %v171_v44, 0  ;;  %v915_v17 = vld [vmem:[#allocation7 + $0x4] ss:$8 sps:$4 sm:$0xff]  }
  0xf5   :  { %vm172_vm14 = vcmp.lt.s32.totalorder %v171_v44, 2 }
  0xf6   :  { %v146_v20 = vclz %v773_v19  ;;  %vm280_vm11 = vcmp.eq.s32.totalorder %v275_v45, 2  ;;  %vm277_vm13 = vcmp.eq.s32.totalorder %v275_v45, 0  ;;  %vm276_vm15 = vcmp.lt.s32.totalorder %v275_v45, 2  ;;  %v913_v19 = vld [vmem:[#allocation7] ss:$8 sps:$4 sm:$0xff]  }
  0xf8   :  { %v774_v22 = vadd.s32 4294967294, %v146_v20  ;;  %v918_v20 = vld [vmem:[#allocation7 + $0x14] ss:$8 sps:$4 sm:$0xff]  }
  0xfa   :  { %vm775_vm7 = vcmp.lt.s32.totalorder %v774_v22, 0 }
  0xfb   :  { %v149_v24 = vsel %vm775_vm7, 0, %v774_v22  ;;  %v916_v22 = vld [vmem:[#allocation7 + $0x10] ss:$8 sps:$4 sm:$0xff]  }
  0xfc   :  { %v150_v26 = vsub.s32 32, %v149_v24  ;;  %v154_v27 = vsub.s32 4294967266, %v149_v24  ;;  %v151_v28 = vshll.u32 %v142_v16, %v149_v24  ;;  %v921_v24 = vld [vmem:[#allocation7 + $0x24] ss:$8 sps:$4 sm:$0xff]  }
  0xfe   :  { %v152_v29 = vshrl.u32 %v134_v25, %v150_v26  ;;  %v155_v30 = vadd.s32 127, %v154_v27  ;;  %v919_v25 = vld [vmem:[#allocation7 + $0x20] ss:$8 sps:$4 sm:$0xff]   ;;  %v924_v26 = vld [vmem:[#allocation7 + $0x34] ss:$8 sps:$4 sm:$0xff]  }
  0xff   :  { %v922_v27 = vld [vmem:[#allocation7 + $0x30] ss:$8 sps:$4 sm:$0xff]  }
 0x100   :  { %v153_v31 = vor.u32 %v152_v29, %v151_v28  ;;  %v156_v32 = vshll.u32 %v155_v30, 23  ;;  %v927_v28 = vld [vmem:[#allocation7 + $0x44] ss:$8 sps:$4 sm:$0xff]   ;;  %v925_v29 = vld [vmem:[#allocation7 + $0x40] ss:$8 sps:$4 sm:$0xff]  }
 0x101   :  { %v930_v30 = vld [vmem:[#allocation7 + $0x54] ss:$8 sps:$4 sm:$0xff]  }
 0x102   :  { %v157_v33 = vor.u32 4788187, %v156_v32  ;;  %v160_v35 = vcvt.s32.f32 %v153_v31  ;;  %v928_v31 = vld [vmem:[#allocation7 + $0x50] ss:$8 sps:$4 sm:$0xff]   ;;  %v933_v32 = vld [vmem:[#allocation7 + $0x64] ss:$8 sps:$4 sm:$0xff]  }
 0x104   :  { %v158_v34 = vand.u32 2147483647, %v157_v33  ;;  %v931_v33 = vld [vmem:[#allocation7 + $0x60] ss:$8 sps:$4 sm:$0xff]  }
 0x106   :  { %v161_v36 = vmul.f32 %v160_v35, %v158_v34  ;;  %v936_v34 = vld [vmem:[#allocation7 + $0x74] ss:$8 sps:$4 sm:$0xff]   ;;  %v934_v35 = vld [vmem:[#allocation7 + $0x70] ss:$8 sps:$4 sm:$0xff]  }
 0x108   :  { %v162_v38 = vxor.u32 2147483648, %v161_v36 }
 0x10a   :  { %v163_v39 = vsel %vm80_vm8, %v162_v38, %v161_v36  ;;  %v1084_v36 = vmov 0  }
 0x10b   :  { %v166_v41 = vsel %vm79_vm9, %v1166_v21, %v163_v39  ;;  %v910_v21 = vld [vmem:[#allocation5 + $0x90] sm:$0xff]  }
 0x10c   :  { %937 = vcosq.f32 %v166_v41  ;;  %859 = vmatpush3.bf16.msra.mxu1 %v910_v21 }
 0x10d   :  { %939 = vsinq.f32 %v166_v41  ;;  %860 = vmatprep.subr.bf16.mxu1 %v1076_v18 }
 0x110   :  { %861 = vmatpush3.bf16.msra.mxu1 %v911_v62 }
 0x111   :  { %862 = vmatprep.subr.bf16.mxu1 %v1076_v18 }
 0x114   :  { %863 = vmatpush3.bf16.msra.mxu1 %v912_v63 }
 0x115   :  { %711 = vmatprep.subr.bf16.mxu1 %v915_v17 }
 0x116   :  { %v938_v46 = vpop.eup %937 }
 0x117   :  { %v940_v47 = vpop.eup %939  ;;  %v177_v48 = vxor.u32 2147483648, %v938_v46 }
 0x118   :  { %v174_v49 = vxor.u32 2147483648, %v940_v47 }
 0x119   :  { %v178_v50 = vsel %vm176_vm10, %v177_v48, %v940_v47  ;;  %v282_v23 = vsel %vm280_vm11, %v177_v48, %v940_v47 }
 0x11a   :  { %v175_v51 = vsel %vm173_vm12, %v938_v46, %v174_v49  ;;  %v279_v52 = vsel %vm277_vm13, %v938_v46, %v174_v49  ;;  %v621_v49 = vlaneseq }
 0x11b   :  { %v179_v53 = vsel %vm172_vm14, %v175_v51, %v178_v50  ;;  %v283_v54 = vsel %vm276_vm15, %v279_v52, %v282_v23  ;;  %v619_v51 = vld [vmem:[#allocation8 + $0x2] ss:$8 sm:$0x3] }
 0x11c   :  { %v180_v55 = vsel %vm170_vm1, nan, %v179_v53  ;;  %v284_v56 = vsel %vm170_vm1, nan, %v283_v54  ;;  %v622_v50 = vshrl.u32 %v621_v49, 7 }
 0x11d   :  { %v285_v57 = vpack.c.bf16 %v180_v55, %v180_v55  ;;  %v286_v58 = vpack.c.bf16 %v284_v56, %v284_v56 }
 0x11e   :  { %v623_v23 = vsub.s32 0, %v622_v50  ;;  %v627_v52 = vsub.s32 1, %v622_v50 }
 0x11f   :  { %461 = vmatprep.mubr.bf16.mxu0 %v286_v58 }
 0x120   :  { %462 = vmatmul.mubr.bf16.vlgmr.msra.gmra.mrb[0].mxu0 %v285_v57  ;;  %v624_v53 = vrot.slane %v619_v51, %v623_v23  ;;  %v628_v54 = vrot.slane %v619_v51, %v627_v52 }
 0x121   :  { %851 = vmatpush3.bf16.msra.mxu0 %v908_v59  ;;  %852 = vmatprep.mubr.msk.bf16.mxu0 %vm1077_vm0, %v1076_v18  ;;  %vm550_vm0 = vcmask 523264  }
 0x128   :  { %853 = vmatmul.mubr.msk.bf16.vlgmr.msra.gmra.mrb[4].mxu0 %vm425_vm2, %v287_v60 }
 0x1f3   :  { %v837_v0 = vpop.f32.mrb[0].mxu0 }
 0x1f4   :  { %v838_v2 = vpop.f32.mrb[1].mxu0 }
 0x1f5   :  { %v839_v3 = vadd.f32 %v838_v2, %v837_v0  ;;  %v840_v1 = vpop.f32.mrb[2].mxu0 }
 0x1f6   :  { %v841_v4 = vpop.f32.mrb[3].mxu0 }
 0x1f7   :  { %v464_v6 = vadd.f32 %v839_v3, %v322_v5 }
 0x1fb   :  { %v503_v7 = vpop.f32.mrb[4].mxu0 }
 0x1fc   :  { %v504_v8 = vadd.f32 %v503_v7, %v464_v6  ;;  %v854_v9 = vpop.f32.mrb[5].mxu0 }
 0x1fd   :  { %v506_v10 = vpop.f32.mrb[6].mxu0 }
 0x1fe   :  { %v798_v11 = vmul.f32 -1.442695, %v504_v8  ;;  %v855_v12 = vpop.f32.mrb[7].mxu0 }
 0x200   :  { %941 = vpow2.f32 %v798_v11 }
 0x20a   :  { %v942_v13 = vpop.eup %941 }
 0x20b   :  { %v512_v14 = vadd.f32 1.0, %v942_v13 }
 0x20d   :  { %943 = vrcp.f32 %v512_v14 }
 0x217   :  { %v944_v18 = vpop.eup %943 }
 0x218   :  { %v515_v15 = vmul.f32 %v944_v18, %v504_v8 }
 0x21a   :  { %v516_v16 = vpack.c.bf16 %v515_v15, %v515_v15 }
 0x21c   :  { %865 = vmatmul.mubr.msk.bf16.vlgmr.msra.gmra.mrb[0].mxu1 %vm550_vm0, %v516_v16 }
 0x21d   :  { %712 = vmatpush1.bf16.msra.mxu1 %v913_v19  ;;  %743 = vmatprep.mubr.bf16.mxu1 %v1084_v36 }
 0x21e   :  { %713 = vmatprep.subr.bf16.mxu1 %v918_v20 }
 0x221   :  { %714 = vmatpush1.bf16.msra.mxu1 %v916_v22 }
 0x222   :  { %715 = vmatprep.subr.bf16.mxu1 %v921_v24 }
 0x225   :  { %716 = vmatpush1.bf16.msra.mxu1 %v919_v25 }
 0x226   :  { %717 = vmatprep.subr.bf16.mxu1 %v924_v26 }
 0x229   :  { %718 = vmatpush1.bf16.msra.mxu1 %v922_v27 }
 0x22a   :  { %719 = vmatprep.subr.bf16.mxu1 %v927_v28 }
 0x22d   :  { %720 = vmatpush1.bf16.msra.mxu1 %v925_v29 }
 0x22e   :  { %721 = vmatprep.subr.bf16.mxu1 %v930_v30 }
 0x231   :  { %722 = vmatpush1.bf16.msra.mxu1 %v928_v31 }
 0x232   :  { %723 = vmatprep.subr.bf16.mxu1 %v933_v32 }
 0x235   :  { %724 = vmatpush1.bf16.msra.mxu1 %v931_v33 }
 0x236   :  { %725 = vmatprep.subr.bf16.mxu1 %v936_v34 }
 0x239   :  { %726 = vmatpush1.bf16.msra.mxu1 %v934_v35 }
 0x2ef   :  { %v588_v38 = vpop.f32.mrb[0].mxu1 }
 0x2f0   :  { %v589_v39 = vadd.f32 %v588_v38, %v525_v37  ;;  %v866_v40 = vpop.f32.mrb[1].mxu1 }
 0x2f1   :  { %v591_v41 = vpop.f32.mrb[2].mxu1 }
 0x2f2   :  { %v804_v42 = vmul.f32 -1.442695, %v589_v39  ;;  %754 = vst [vmem:[#allocation10 + $0x10] sm:$0xff] %v589_v39  ;;  %v867_v43 = vpop.f32.mrb[3].mxu1 }
 0x2f4   :  { %945 = vpow2.f32 %v804_v42 }
 0x2fe   :  { %v946_v44 = vpop.eup %945 }
 0x2ff   :  { %v597_v45 = vadd.f32 1.0, %v946_v44 }
 0x301   :  { %947 = vrcp.f32 %v597_v45 }
 0x30b   :  { %v948_v46 = vpop.eup %947 }
 0x30c   :  { %v600_v47 = vmul.f32 %v948_v46, %v589_v39 }
 0x30e   :  { %v601_v48 = vpack.c.bf16 %v600_v47, %v600_v47 }
 0x310   :  { %744 = vmatmul.mubr.bf16.vlgmr.msra.gmra.mrb[4].mxu1 %v601_v48 }
 0x3e3   :  { %v745_v55 = vpop.f32.mrb[4].mxu1 }
 0x3e4   :  { %v746_v56 = vadd.f32 %v745_v55, %v624_v53  ;;  %v747_v57 = vpop.f32.mrb[5].mxu1 }
 0x3e5   :  { %v748_v58 = vadd.f32 %v747_v57, %v628_v54  ;;  %v749_v59 = vpop.f32.mrb[6].mxu1 }
 0x3e6   :  { %752 = vst [vmem:[#allocation10] sm:$0xff] %v746_v56  ;;  %v750_v60 = vpop.f32.mrb[7].mxu1 }
 0x3e7   :  { %753 = vst [vmem:[#allocation10 + $0x8] sm:$0xff] %v748_v58 }
 0x3e8   :  { %1048 = shalt.err (!%p1045_p8)
}
 0x3e9   :  { %s1049_s15 = scalar_lea.hbm %s1210_s4, 384 }
 0x3ea   :  { %p1050_p9 = scmp.ne.s32.totalorder %s1210_s4, %s1049_s15  ;;  %p1053_p10 = scmp.lt.u32.totalorder %s1049_s15, %s1210_s4 }
 0x3ec   :  { %p1055_p11 = pnand %p1053_p10, %p1050_p9 }
 0x3ee   :  { %1058 = shalt.err (!%p1055_p11)
}
 0x3ef   :  { %764 = dma.vmem_to_hbm [thread:$0]  %s762_s12, 384, %s1210_s4, [#allocation4]  }
 0x3f0   :  { %1065 = dma.done.wait [#allocation4], 384  }
 0x3f1   :  { %1066 = vsyncadd [#allocation4], 4294966912 }
 0x3f2   :  { %768 = vsyncpa [#allocation3], 1 }
 0x3f3   :  { %769 = vsyncpa [#allocation6], 1 }
 0x3f4   :  { %770 = vsyncpa [#allocation9], 1 }
 0x3f5   :  { %771 = vsyncpa [#allocation4], 1 }

// kernel: tpu_custom_call.1
= control target key start
LH: loop header
LB: loop body
LE: loop exit
PB: predicated region body
PF: predicated region fallthrough
CT: control target
= control target key end

     0   :  { %9 = vsyncpa [#allocation3], 0  ;;  %s1206_s0 = inlined_call_operand.hbm [shape: f32[8,17], index: 0, kind: input, shape index: {}]   ;;  %s1207_s1 = inlined_call_operand.hbm [shape: bf16[336,128], index: 1, kind: input, shape index: {}]   ;;  %s1208_s2 = inlined_call_operand.hbm [shape: bf16[128,256], index: 2, kind: input, shape index: {}]   ;;  %s1209_s3 = inlined_call_operand.hbm [shape: f32[8,256], index: 3, kind: input, shape index: {}]   ;;  %s1210_s4 = inlined_call_operand.hbm [shape: f32[8,384], index: 4, kind: output, shape index: {}]  }
   0x1   :  { %10 = vsyncpa [#allocation6], 0 }
   0x2   :  { %11 = vsyncpa [#allocation9], 0 }
   0x3   :  { %12 = vsyncpa [#allocation4], 0  ;;  %s1067_s15 = smov [#allocation5]   ;;  %s949_s19 = scalar_lea.hbm %s1207_s1, 2688 }
   0x4   :  { %s28_s16 = sshll.u32 %s1067_s15, 4  ;;  %p950_p0 = scmp.ne.s32.totalorder %s1207_s1, %s949_s19  ;;  %s29_s16 = int_to_ptr.vmem [resolvable:$true] %s28_s16 }
   0x5   :  { %p953_p1 = scmp.lt.u32.totalorder %s949_s19, %s1207_s1 }
   0x7   :  { %p955_p2 = pnand %p953_p1, %p950_p0 }
   0x9   :  { %958 = shalt.err (!%p955_p2)
}
   0xa   :  { %s959_s24 = scalar_lea.vmem %s29_s16, 2688  ;;  %p964_p4 = scmp.lt.s32.totalorder %s29_s16, %s29_s16 }
   0xb   :  { %p960_p3 = scmp.ne.s32.totalorder %s29_s16, %s959_s24  ;;  %p965_p5 = scmp.lt.s32.totalorder %s959_s24, %s959_s24 }
   0xd   :  { %p966_p6 = por %p965_p5, %p964_p4 }
   0xf   :  { %p967_p7 = pnand %p966_p6, %p960_p3 }
  0x11   :  { %970 = shalt.err (!%p967_p7)
}
  0x12   :  { %s1068_s25 = smov 64   ;;  %s1069_s26 = smov 4  }
  0x13   :  { %34 = dma.hbm_to_vmem [thread:$0]  %s1207_s1, 2688, %s29_s16, [#allocation6], %s1068_s25, %s1068_s25, %s1069_s26  }
  0x14   :  { %s1070_s29 = smov [#allocation2]   ;;  %s1071_s5 = smov [#allocation7]  }
  0x15   :  { %s19_s30 = sshll.u32 %s1070_s29, 4  ;;  %s40_s6 = sshll.u32 %s1071_s5, 4  ;;  %s20_s30 = int_to_ptr.vmem [resolvable:$true] %s19_s30  ;;  %s41_s6 = int_to_ptr.vmem [resolvable:$true] %s40_s6 }
  0x16   :  { %s971_s9 = scalar_lea.hbm %s1206_s0, 128 }
  0x17   :  { %p972_p8 = scmp.ne.s32.totalorder %s1206_s0, %s971_s9  ;;  %p975_p9 = scmp.lt.u32.totalorder %s971_s9, %s1206_s0 }
  0x19   :  { %p977_p10 = pnand %p975_p9, %p972_p8 }
  0x1b   :  { %980 = shalt.err (!%p977_p10)
}
  0x1c   :  { %s981_s1 = scalar_lea.vmem %s20_s30, 128  ;;  %p986_p12 = scmp.lt.s32.totalorder %s20_s30, %s20_s30 }
  0x1d   :  { %p982_p11 = scmp.ne.s32.totalorder %s20_s30, %s981_s1  ;;  %p987_p13 = scmp.lt.s32.totalorder %s981_s1, %s981_s1 }
  0x1f   :  { %p988_p0 = por %p987_p13, %p986_p12 }
  0x21   :  { %p989_p1 = pnand %p988_p0, %p982_p11 }
  0x23   :  { %992 = shalt.err (!%p989_p1)
}
  0x24   :  { %22 = dma.hbm_to_vmem [thread:$0]  %s1206_s0, 128, %s20_s30, [#allocation3]  }
  0x25   :  { %s993_s18 = scalar_lea.hbm %s1208_s2, 2048 }
  0x26   :  { %p994_p2 = scmp.ne.s32.totalorder %s1208_s2, %s993_s18  ;;  %p997_p3 = scmp.lt.u32.totalorder %s993_s18, %s1208_s2 }
  0x28   :  { %p999_p4 = pnand %p997_p3, %p994_p2 }
  0x2a   :  { %1002 = shalt.err (!%p999_p4)
}
  0x2b   :  { %s1003_s23 = scalar_lea.vmem %s41_s6, 2048  ;;  %p1008_p6 = scmp.lt.s32.totalorder %s41_s6, %s41_s6 }
  0x2c   :  { %p1004_p5 = scmp.ne.s32.totalorder %s41_s6, %s1003_s23  ;;  %p1009_p7 = scmp.lt.s32.totalorder %s1003_s23, %s1003_s23 }
  0x2e   :  { %p1010_p8 = por %p1009_p7, %p1008_p6 }
  0x30   :  { %p1011_p9 = pnand %p1010_p8, %p1004_p5 }
  0x32   :  { %1014 = shalt.err (!%p1011_p9)
}
  0x33   :  { %s1072_s0 = smov 128   ;;  %s1073_s24 = smov 8  }
  0x34   :  { %46 = dma.hbm_to_vmem [thread:$0]  %s1208_s2, 2048, %s41_s6, [#allocation6], %s1072_s0, %s1072_s0, %s1073_s24  }
  0x35   :  { %s1074_s27 = smov [#allocation8]   ;;  %s1015_s5 = scalar_lea.hbm %s1209_s3, 256 }
  0x36   :  { %s53_s28 = sshll.u32 %s1074_s27, 4  ;;  %p1016_p10 = scmp.ne.s32.totalorder %s1209_s3, %s1015_s5  ;;  %s54_s28 = int_to_ptr.vmem [resolvable:$true] %s53_s28 }
  0x37   :  { %p1019_p11 = scmp.lt.u32.totalorder %s1015_s5, %s1209_s3 }
  0x39   :  { %p1021_p12 = pnand %p1019_p11, %p1016_p10 }
  0x3b   :  { %1024 = shalt.err (!%p1021_p12)
}
  0x3c   :  { %s1025_s11 = scalar_lea.vmem %s54_s28, 256  ;;  %p1030_p0 = scmp.lt.s32.totalorder %s54_s28, %s54_s28 }
  0x3d   :  { %p1026_p13 = scmp.ne.s32.totalorder %s54_s28, %s1025_s11  ;;  %p1031_p1 = scmp.lt.s32.totalorder %s1025_s11, %s1025_s11 }
  0x3f   :  { %p1032_p2 = por %p1031_p1, %p1030_p0 }
  0x41   :  { %p1033_p3 = pnand %p1032_p2, %p1026_p13 }
  0x43   :  { %1036 = shalt.err (!%p1033_p3)
}
  0x44   :  { %56 = dma.hbm_to_vmem [thread:$0]  %s1209_s3, 256, %s54_s28, [#allocation9]  }
  0x45   :  { %1059 = dma.done.wait [#allocation3], 128  }
  0x46   :  { %1060 = vsyncadd [#allocation3], 4294967168 }
  0x47   :  { %1061 = dma.done.wait [#allocation6], 4736  }
  0x48   :  { %1062 = vsyncadd [#allocation6], 4294962560 }
  0x49   :  { %1063 = dma.done.wait [#allocation9], 256  }
  0x4a   :  { %1064 = vsyncadd [#allocation9], 4294967040  ;;  %v1075_v0 = vmov 16   ;;  %v1159_v1 = vld [vmem:[#allocation2] sm:$0xff]  ;;  %v892_v2 = vld [vmem:[#allocation5 + $0x40] sm:$0xff]   ;;  %v1076_v18 = vmov 0.0  }
  0x4b   :  { %891 = vset.pattern.permute.xlu0 %v1075_v0  ;;  %v893_v3 = vld [vmem:[#allocation5] sm:$0xff]   ;;  %v894_v4 = vld [vmem:[#allocation5 + $0x48] sm:$0xff]   ;;  %821 = vmatprep.subr.bf16.mxu0 %v892_v2  ;;  %v896_v6 = vld [vmem:[#allocation5 + $0x50] sm:$0xff]   ;;  %vm1077_vm0 = vmmov 0   ;;  %v1078_v33 = vmov 2102212464  }
  0x4c   :  { %74 = vperm.xlu0 %891, %v1159_v1   ;;  %822 = vmatpush3.bf16.msra.mxu0 %v893_v3  ;;  %v895_v5 = vld [vmem:[#allocation5 + $0x8] sm:$0xff]   ;;  %v897_v7 = vld [vmem:[#allocation5 + $0x10] sm:$0xff]   ;;  %v898_v8 = vld [vmem:[#allocation5 + $0x58] sm:$0xff]   ;;  %v1079_v35 = vmov 920167782   ;;  %s1085_s3 = smov [#allocation10]  }
  0x4d   :  { %823 = vmatprep.subr.bf16.mxu0 %v894_v4  ;;  %v899_v9 = vld [vmem:[#allocation5 + $0x18] sm:$0xff]   ;;  %v900_v10 = vld [vmem:[#allocation5 + $0x60] sm:$0xff]   ;;  %v902_v12 = vld [vmem:[#allocation5 + $0x68] sm:$0xff]   ;;  %856 = vmatprep.subr.bf16.mxu1 %v1076_v18  ;;  %v1080_v39 = vmov 1326507024   ;;  %s761_s12 = sshll.u32 %s1085_s3, 4  ;;  %s762_s12 = int_to_ptr.vmem [resolvable:$true] %s761_s12 }
  0x4e   :  { %v901_v11 = vld [vmem:[#allocation5 + $0x20] sm:$0xff]   ;;  %v903_v13 = vld [vmem:[#allocation5 + $0x28] sm:$0xff]   ;;  %v904_v14 = vld [vmem:[#allocation5 + $0x70] sm:$0xff]   ;;  %864 = vmatprep.mubr.msk.bf16.mxu1 %vm1077_vm0, %v1076_v18  ;;  %v1081_v41 = vmov 683565275   ;;  %s1037_s13 = scalar_lea.vmem %s762_s12, 384  ;;  %p1042_p5 = scmp.lt.s32.totalorder %s762_s12, %s762_s12 }
  0x4f   :  { %v905_v15 = vld [vmem:[#allocation5 + $0x30] sm:$0xff]   ;;  %v906_v16 = vld [vmem:[#allocation5 + $0x78] sm:$0xff]   ;;  %v71_v19 = vld [vmem:[#allocation8 + $0x3] ss:$0 sm:$0xff]  ;;  %v1082_v43 = vmov 2475754826   ;;  %p1038_p4 = scmp.ne.s32.totalorder %s762_s12, %s1037_s13  ;;  %p1043_p6 = scmp.lt.s32.totalorder %s1037_s13, %s1037_s13 }
  0x50   :  { %824 = vmatpush3.bf16.msra.mxu0 %v895_v5  ;;  %v907_v17 = vld [vmem:[#allocation5 + $0x38] sm:$0xff]   ;;  %v1083_v46 = vmov 2131351028  }
  0x51   :  { %825 = vmatprep.subr.bf16.mxu0 %v896_v6  ;;  %p1044_p7 = por %p1043_p6, %p1042_p5 }
  0x53   :  { %p1045_p8 = pnand %p1044_p7, %p1038_p4 }
  0x54   :  { %826 = vmatpush3.bf16.msra.mxu0 %v897_v7 }
  0x55   :  { %827 = vmatprep.subr.bf16.mxu0 %v898_v8 }
  0x58   :  { %828 = vmatpush3.bf16.msra.mxu0 %v899_v9 }
  0x59   :  { %829 = vmatprep.subr.bf16.mxu0 %v900_v10 }
  0x5c   :  { %830 = vmatpush3.bf16.msra.mxu0 %v901_v11 }
  0x5d   :  { %831 = vmatprep.subr.bf16.mxu0 %v902_v12 }
  0x60   :  { %832 = vmatpush3.bf16.msra.mxu0 %v903_v13 }
  0x61   :  { %833 = vmatprep.subr.bf16.mxu0 %v904_v14 }
  0x64   :  { %834 = vmatpush3.bf16.msra.mxu0 %v905_v15 }
  0x65   :  { %835 = vmatprep.subr.bf16.mxu0 %v906_v16 }
  0x68   :  { %836 = vmatpush3.bf16.msra.mxu0 %v907_v17 }
  0x69   :  { %850 = vmatprep.subr.bf16.mxu0 %v1076_v18 }
  0xcb   :  { %v75_v20 = vpop.permute.xlu0 %74 }
  0xcc   :  { %v1166_v21 = vmul.f32 %v75_v20, %v71_v19 }
  0xce   :  { %v81_v22 = vand.u32 2139095040, %v1166_v21  ;;  %v78_v23 = vand.u32 2147483647, %v1166_v21  ;;  %vm80_vm8 = vcmp.lt.s32.totalorder %v1166_v21, 0 }
  0xd0   :  { %v82_v24 = vshrl.u32 %v81_v22, 23  ;;  %v85_v26 = vand.u32 8388607, %v78_v23  ;;  %vm79_vm9 = vcmp.le.f32.partialorder %v78_v23, 0.7853982 }
  0xd2   :  { %v772_v25 = vadd.s32 4294967169, %v82_v24  ;;  %v86_v29 = vor.u32 8388608, %v85_v26 }
  0xd4   :  { %v88_v27 = vadd.s32 1, %v772_v25  ;;  %v126_v37 = vshll.u32 %v86_v29, 8 }
  0xd6   :  { %vm89_vm1 = vcmp.gt.s32.totalorder %v88_v27, 0 }
  0xd7   :  { %v90_v28 = vsel %vm89_vm1, %v88_v27, 0  ;;  %vm170_vm1 = vweird.f32 %v1166_v21 }
  0xd8   :  { %v92_v30 = vand.u32 31, %v90_v28  ;;  %v91_v31 = vshrl.u32 %v90_v28, 5 }
  0xda   :  { %v93_v32 = vsub.s32 32, %v92_v30  ;;  %v104_v34 = vshll.u32 %v1078_v33, %v92_v30  ;;  %v107_v36 = vshll.u32 %v1079_v35, %v92_v30  ;;  %v95_v42 = vshll.u32 %v1081_v41, %v92_v30 }
  0xdb   :  { %v98_v45 = vshll.u32 %v1082_v43, %v92_v30  ;;  %v101_v48 = vshll.u32 %v1083_v46, %v92_v30  ;;  %vm113_vm2 = vcmp.lt.s32.totalorder %v91_v31, 4  ;;  %vm110_vm3 = vcmp.lt.s32.totalorder %v91_v31, 1 }
  0xdc   :  { %v105_v38 = vshrl.u32 %v1079_v35, %v93_v32  ;;  %v108_v40 = vshrl.u32 %v1080_v39, %v93_v32  ;;  %v96_v44 = vshrl.u32 %v1082_v43, %v93_v32  ;;  %v99_v47 = vshrl.u32 %v1083_v46, %v93_v32 }
  0xdd   :  { %v102_v49 = vshrl.u32 %v1078_v33, %v93_v32  ;;  %v94_v53 = vshrl.u32 %v1081_v41, %v93_v32  ;;  %vm111_vm4 = vcmp.lt.s32.totalorder %v91_v31, 2  ;;  %vm112_vm5 = vcmp.lt.s32.totalorder %v91_v31, 3 }
  0xde   :  { %v106_v50 = vor.u32 %v105_v38, %v104_v34  ;;  %v109_v51 = vor.u32 %v108_v40, %v107_v36  ;;  %v97_v52 = vor.u32 %v96_v44, %v95_v42  ;;  %v100_v54 = vor.u32 %v99_v47, %v98_v45 }
  0xdf   :  { %v103_v55 = vor.u32 %v102_v49, %v101_v48 }
  0xe0   :  { %v119_v56 = vsel %vm113_vm2, %v106_v50, 920167782  ;;  %v123_v57 = vsel %vm113_vm2, %v109_v51, 1326507024  ;;  %v118_v59 = vsel %vm110_vm3, %v97_v52, %v100_v54  ;;  %v114_v62 = vsel %vm110_vm3, %v94_v53, %v97_v52 }
  0xe1   :  { %v115_v58 = vsel %vm113_vm2, %v103_v55, 2102212464  ;;  %v120_v60 = vsel %vm112_vm5, %v103_v55, %v119_v56  ;;  %v122_v61 = vsel %vm110_vm3, %v100_v54, %v103_v55  ;;  %v124_v2 = vsel %vm112_vm5, %v106_v50, %v123_v57 }
  0xe2   :  { %v116_v63 = vsel %vm112_vm5, %v100_v54, %v115_v58  ;;  %v121_v0 = vsel %vm111_vm4, %v118_v59, %v120_v60  ;;  %v125_v3 = vsel %vm111_vm4, %v122_v61, %v124_v2  ;;  %v908_v59 = vld [vmem:[#allocation5 + $0x80] sm:$0xff]   ;;  %v287_v60 = vpack.c.bf16 %v1159_v1, %v1159_v1  ;;  %v909_v61 = vld [vmem:[#allocation5 + $0x88] sm:$0xff]  }
  0xe3   :  { %v1172_v4 = vmul.u32.u64.low %v126_v37, %v121_v0  ;;  %v1173_v5 = vmul.u32.u64.high %v126_v37, %v121_v0, %v1172_v4  ;;  %v1175_v6 = vmul.u32.u64.low %v126_v37, %v125_v3  ;;  %v1176_v7 = vmul.u32.u64.high %v126_v37, %v125_v3, %v1175_v6  ;;  %857 = vmatpush3.bf16.msra.mxu1 %v909_v61 }
  0xe4   :  { %v117_v8 = vsel %vm111_vm4, %v114_v62, %v116_v63  ;;  %vm425_vm2 = vcmask 130048   ;;  %858 = vmatprep.subr.bf16.mxu1 %v1076_v18  ;;  %v911_v62 = vld [vmem:[#allocation5 + $0x98] sm:$0xff]   ;;  %v912_v63 = vld [vmem:[#allocation5 + $0xa0] sm:$0xff]  }
  0xe5   :  { %v136_v9 = vadd.s32 1, %v1173_v5  ;;  %v133_v10 = vmul.u32 %v126_v37, %v117_v8  ;;  %vm135_vm6 = vc.u32 %v1176_v7, %v1172_v4  ;;  %v134_v25 = vadd.s32 %v1172_v4, %v1176_v7 }
  0xe7   :  { %v137_v11 = vsel %vm135_vm6, %v136_v9, %v1173_v5  ;;  %v322_v5 = vld [vmem:[#allocation8] ss:$0 sm:$0xff] }
  0xe8   :  { %v138_v12 = vadd.s32 %v137_v11, %v133_v10 }
  0xea   :  { %v139_v13 = vadd.s32 536870912, %v138_v12 }
  0xec   :  { %v140_v14 = vshrl.u32 %v139_v13, 30 }
  0xee   :  { %v141_v15 = vshll.u32 %v140_v14, 30  ;;  %v164_v37 = vsub.s32 4, %v140_v14 }
  0xf0   :  { %v142_v16 = vsub.s32 %v138_v12, %v141_v15  ;;  %v165_v40 = vsel %vm80_vm8, %v164_v37, %v140_v14  ;;  %v525_v37 = vld [vmem:[#allocation8 + $0x1] ss:$0 sm:$0xff] }
  0xf1   :  { %v167_v42 = vsel %vm79_vm9, 0, %v165_v40 }
  0xf2   :  { %v144_v17 = vsub.s32 0, %v142_v16  ;;  %v274_v43 = vadd.s32 3, %v167_v42  ;;  %v171_v44 = vand.u32 3, %v167_v42 }
  0xf4   :  { %v773_v19 = vmin.u32 %v144_v17, %v142_v16  ;;  %v275_v45 = vand.u32 3, %v274_v43  ;;  %vm176_vm10 = vcmp.eq.s32.totalorder %v171_v44, 2  ;;  %vm173_vm12 = vcmp.eq.s32.totalorder %v171_v44, 0  ;;  %v915_v17 = vld [vmem:[#allocation7 + $0x4] ss:$8 sps:$4 sm:$0xff]  }
  0xf5   :  { %vm172_vm14 = vcmp.lt.s32.totalorder %v171_v44, 2 }
  0xf6   :  { %v146_v20 = vclz %v773_v19  ;;  %vm280_vm11 = vcmp.eq.s32.totalorder %v275_v45, 2  ;;  %vm277_vm13 = vcmp.eq.s32.totalorder %v275_v45, 0  ;;  %vm276_vm15 = vcmp.lt.s32.totalorder %v275_v45, 2  ;;  %v913_v19 = vld [vmem:[#allocation7] ss:$8 sps:$4 sm:$0xff]  }
  0xf8   :  { %v774_v22 = vadd.s32 4294967294, %v146_v20  ;;  %v918_v20 = vld [vmem:[#allocation7 + $0x14] ss:$8 sps:$4 sm:$0xff]  }
  0xfa   :  { %vm775_vm7 = vcmp.lt.s32.totalorder %v774_v22, 0 }
  0xfb   :  { %v149_v24 = vsel %vm775_vm7, 0, %v774_v22  ;;  %v916_v22 = vld [vmem:[#allocation7 + $0x10] ss:$8 sps:$4 sm:$0xff]  }
  0xfc   :  { %v150_v26 = vsub.s32 32, %v149_v24  ;;  %v154_v27 = vsub.s32 4294967266, %v149_v24  ;;  %v151_v28 = vshll.u32 %v142_v16, %v149_v24  ;;  %v921_v24 = vld [vmem:[#allocation7 + $0x24] ss:$8 sps:$4 sm:$0xff]  }
  0xfe   :  { %v152_v29 = vshrl.u32 %v134_v25, %v150_v26  ;;  %v155_v30 = vadd.s32 127, %v154_v27  ;;  %v919_v25 = vld [vmem:[#allocation7 + $0x20] ss:$8 sps:$4 sm:$0xff]   ;;  %v924_v26 = vld [vmem:[#allocation7 + $0x34] ss:$8 sps:$4 sm:$0xff]  }
  0xff   :  { %v922_v27 = vld [vmem:[#allocation7 + $0x30] ss:$8 sps:$4 sm:$0xff]  }
 0x100   :  { %v153_v31 = vor.u32 %v152_v29, %v151_v28  ;;  %v156_v32 = vshll.u32 %v155_v30, 23  ;;  %v927_v28 = vld [vmem:[#allocation7 + $0x44] ss:$8 sps:$4 sm:$0xff]   ;;  %v925_v29 = vld [vmem:[#allocation7 + $0x40] ss:$8 sps:$4 sm:$0xff]  }
 0x101   :  { %v930_v30 = vld [vmem:[#allocation7 + $0x54] ss:$8 sps:$4 sm:$0xff]  }
 0x102   :  { %v157_v33 = vor.u32 4788187, %v156_v32  ;;  %v160_v35 = vcvt.s32.f32 %v153_v31  ;;  %v928_v31 = vld [vmem:[#allocation7 + $0x50] ss:$8 sps:$4 sm:$0xff]   ;;  %v933_v32 = vld [vmem:[#allocation7 + $0x64] ss:$8 sps:$4 sm:$0xff]  }
 0x104   :  { %v158_v34 = vand.u32 2147483647, %v157_v33  ;;  %v931_v33 = vld [vmem:[#allocation7 + $0x60] ss:$8 sps:$4 sm:$0xff]  }
 0x106   :  { %v161_v36 = vmul.f32 %v160_v35, %v158_v34  ;;  %v936_v34 = vld [vmem:[#allocation7 + $0x74] ss:$8 sps:$4 sm:$0xff]   ;;  %v934_v35 = vld [vmem:[#allocation7 + $0x70] ss:$8 sps:$4 sm:$0xff]  }
 0x108   :  { %v162_v38 = vxor.u32 2147483648, %v161_v36 }
 0x10a   :  { %v163_v39 = vsel %vm80_vm8, %v162_v38, %v161_v36  ;;  %v1084_v36 = vmov 0  }
 0x10b   :  { %v166_v41 = vsel %vm79_vm9, %v1166_v21, %v163_v39  ;;  %v910_v21 = vld [vmem:[#allocation5 + $0x90] sm:$0xff]  }
 0x10c   :  { %937 = vcosq.f32 %v166_v41  ;;  %859 = vmatpush3.bf16.msra.mxu1 %v910_v21 }
 0x10d   :  { %939 = vsinq.f32 %v166_v41  ;;  %860 = vmatprep.subr.bf16.mxu1 %v1076_v18 }
 0x110   :  { %861 = vmatpush3.bf16.msra.mxu1 %v911_v62 }
 0x111   :  { %862 = vmatprep.subr.bf16.mxu1 %v1076_v18 }
 0x114   :  { %863 = vmatpush3.bf16.msra.mxu1 %v912_v63 }
 0x115   :  { %711 = vmatprep.subr.bf16.mxu1 %v915_v17 }
 0x116   :  { %v938_v46 = vpop.eup %937 }
 0x117   :  { %v940_v47 = vpop.eup %939  ;;  %v177_v48 = vxor.u32 2147483648, %v938_v46 }
 0x118   :  { %v174_v49 = vxor.u32 2147483648, %v940_v47 }
 0x119   :  { %v178_v50 = vsel %vm176_vm10, %v177_v48, %v940_v47  ;;  %v282_v23 = vsel %vm280_vm11, %v177_v48, %v940_v47 }
 0x11a   :  { %v175_v51 = vsel %vm173_vm12, %v938_v46, %v174_v49  ;;  %v279_v52 = vsel %vm277_vm13, %v938_v46, %v174_v49  ;;  %v621_v49 = vlaneseq }
 0x11b   :  { %v179_v53 = vsel %vm172_vm14, %v175_v51, %v178_v50  ;;  %v283_v54 = vsel %vm276_vm15, %v279_v52, %v282_v23  ;;  %v619_v51 = vld [vmem:[#allocation8 + $0x2] ss:$8 sm:$0x3] }
 0x11c   :  { %v180_v55 = vsel %vm170_vm1, nan, %v179_v53  ;;  %v284_v56 = vsel %vm170_vm1, nan, %v283_v54  ;;  %v622_v50 = vshrl.u32 %v621_v49, 7 }
 0x11d   :  { %v285_v57 = vpack.c.bf16 %v180_v55, %v180_v55  ;;  %v286_v58 = vpack.c.bf16 %v284_v56, %v284_v56 }
 0x11e   :  { %v623_v23 = vsub.s32 0, %v622_v50  ;;  %v627_v52 = vsub.s32 1, %v622_v50 }
 0x11f   :  { %461 = vmatprep.mubr.bf16.mxu0 %v286_v58 }
 0x120   :  { %462 = vmatmul.mubr.bf16.vlgmr.msra.gmra.mrb[0].mxu0 %v285_v57  ;;  %v624_v53 = vrot.slane %v619_v51, %v623_v23  ;;  %v628_v54 = vrot.slane %v619_v51, %v627_v52 }
 0x121   :  { %851 = vmatpush3.bf16.msra.mxu0 %v908_v59  ;;  %852 = vmatprep.mubr.msk.bf16.mxu0 %vm1077_vm0, %v1076_v18  ;;  %vm550_vm0 = vcmask 523264  }
 0x128   :  { %853 = vmatmul.mubr.msk.bf16.vlgmr.msra.gmra.mrb[4].mxu0 %vm425_vm2, %v287_v60 }
 0x1f3   :  { %v837_v0 = vpop.f32.mrb[0].mxu0 }
 0x1f4   :  { %v838_v2 = vpop.f32.mrb[1].mxu0 }
 0x1f5   :  { %v839_v3 = vadd.f32 %v838_v2, %v837_v0  ;;  %v840_v1 = vpop.f32.mrb[2].mxu0 }
 0x1f6   :  { %v841_v4 = vpop.f32.mrb[3].mxu0 }
 0x1f7   :  { %v464_v6 = vadd.f32 %v839_v3, %v322_v5 }
 0x1fb   :  { %v503_v7 = vpop.f32.mrb[4].mxu0 }
 0x1fc   :  { %v504_v8 = vadd.f32 %v503_v7, %v464_v6  ;;  %v854_v9 = vpop.f32.mrb[5].mxu0 }
 0x1fd   :  { %v506_v10 = vpop.f32.mrb[6].mxu0 }
 0x1fe   :  { %v798_v11 = vmul.f32 -1.442695, %v504_v8  ;;  %v855_v12 = vpop.f32.mrb[7].mxu0 }
 0x200   :  { %941 = vpow2.f32 %v798_v11 }
 0x20a   :  { %v942_v13 = vpop.eup %941 }
 0x20b   :  { %v512_v14 = vadd.f32 1.0, %v942_v13 }
 0x20d   :  { %943 = vrcp.f32 %v512_v14 }
 0x217   :  { %v944_v18 = vpop.eup %943 }
 0x218   :  { %v515_v15 = vmul.f32 %v944_v18, %v504_v8 }
 0x21a   :  { %v516_v16 = vpack.c.bf16 %v515_v15, %v515_v15 }
 0x21c   :  { %865 = vmatmul.mubr.msk.bf16.vlgmr.msra.gmra.mrb[0].mxu1 %vm550_vm0, %v516_v16 }
 0x21d   :  { %712 = vmatpush1.bf16.msra.mxu1 %v913_v19  ;;  %743 = vmatprep.mubr.bf16.mxu1 %v1084_v36 }
 0x21e   :  { %713 = vmatprep.subr.bf16.mxu1 %v918_v20 }
 0x221   :  { %714 = vmatpush1.bf16.msra.mxu1 %v916_v22 }
 0x222   :  { %715 = vmatprep.subr.bf16.mxu1 %v921_v24 }
 0x225   :  { %716 = vmatpush1.bf16.msra.mxu1 %v919_v25 }
 0x226   :  { %717 = vmatprep.subr.bf16.mxu1 %v924_v26 }
 0x229   :  { %718 = vmatpush1.bf16.msra.mxu1 %v922_v27 }
 0x22a   :  { %719 = vmatprep.subr.bf16.mxu1 %v927_v28 }
 0x22d   :  { %720 = vmatpush1.bf16.msra.mxu1 %v925_v29 }
 0x22e   :  { %721 = vmatprep.subr.bf16.mxu1 %v930_v30 }
 0x231   :  { %722 = vmatpush1.bf16.msra.mxu1 %v928_v31 }
 0x232   :  { %723 = vmatprep.subr.bf16.mxu1 %v933_v32 }
 0x235   :  { %724 = vmatpush1.bf16.msra.mxu1 %v931_v33 }
 0x236   :  { %725 = vmatprep.subr.bf16.mxu1 %v936_v34 }
 0x239   :  { %726 = vmatpush1.bf16.msra.mxu1 %v934_v35 }
 0x2ef   :  { %v588_v38 = vpop.f32.mrb[0].mxu1 }
 0x2f0   :  { %v589_v39 = vadd.f32 %v588_v38, %v525_v37  ;;  %v866_v40 = vpop.f32.mrb[1].mxu1 }
 0x2f1   :  { %v591_v41 = vpop.f32.mrb[2].mxu1 }
 0x2f2   :  { %v804_v42 = vmul.f32 -1.442695, %v589_v39  ;;  %754 = vst [vmem:[#allocation10 + $0x10] sm:$0xff] %v589_v39  ;;  %v867_v43 = vpop.f32.mrb[3].mxu1 }
 0x2f4   :  { %945 = vpow2.f32 %v804_v42 }
 0x2fe   :  { %v946_v44 = vpop.eup %945 }
 0x2ff   :  { %v597_v45 = vadd.f32 1.0, %v946_v44 }
 0x301   :  { %947 = vrcp.f32 %v597_v45 }
 0x30b   :  { %v948_v46 = vpop.eup %947 }
 0x30c   :  { %v600_v47 = vmul.f32 %v948_v46, %v589_v39 }
 0x30e   :  { %v601_v48 = vpack.c.bf16 %v600_v47, %v600_v47 }
 0x310   :  { %744 = vmatmul.mubr.bf16.vlgmr.msra.gmra.mrb[4].mxu1 %v601_v48 }
 0x3e3   :  { %v745_v55 = vpop.f32.mrb[4].mxu1 }
 0x3e4   :  { %v746_v56 = vadd.f32 %v745_v55, %v624_v53  ;;  %v747_v57 = vpop.f32.mrb[5].mxu1 }
 0x3e5   :  { %v748_v58 = vadd.f32 %v747_v57, %v628_v54  ;;  %v749_v59 = vpop.f32.mrb[6].mxu1 }
 0x3e6   :  { %752 = vst [vmem:[#allocation10] sm:$0xff] %v746_v56  ;;  %v750_v60 = vpop.f32.mrb[7].mxu1 }
 0x3e7   :  { %753 = vst [vmem:[#allocation10 + $0x8] sm:$0xff] %v748_v58 }
 0x3e8   :  { %1048 = shalt.err (!%p1045_p8)
}
 0x3e9   :  { %s1049_s15 = scalar_lea.hbm %s1210_s4, 384 }
 0x3ea   :  { %p1050_p9 = scmp.ne.s32.totalorder %s1210_s4, %s1049_s15  ;;  %p1053_p10 = scmp.lt.u32.totalorder %s1049_s15, %s1210_s4 }
 0x3ec   :  { %p1055_p11 = pnand %p1053_p10, %p1050_p9 }
 0x3ee   :  { %1058 = shalt.err (!%p1055_p11)
}
 0x3ef   :  { %764 = dma.vmem_to_hbm [thread:$0]  %s762_s12, 384, %s1210_s4, [#allocation4]  }
 0x3f0   :  { %1065 = dma.done.wait [#allocation4], 384  }
 0x3f1   :  { %1066 = vsyncadd [#allocation4], 4294966912 }
 0x3f2   :  { %768 = vsyncpa [#allocation3], 1 }
 0x3f3   :  { %769 = vsyncpa [#allocation6], 1 }
 0x3f4   :  { %770 = vsyncpa [#allocation9], 1 }
 0x3f5   :  { %771 = vsyncpa [#allocation4], 1 }

</bundles_post_ra>
